<compile_context>
chip_gen: v6e
topology: v6e:2x2x1
jax: 0.10.0
libtpu: 0.0.40
codegen_flags: <defaults>
</compile_context>

<pallas_src>
import math

import jax
import jax.numpy as jnp
from jax import lax
from jax.experimental import pallas as pl
from jax.experimental.pallas import tpu as pltpu

EMBED_DIM = 400
NUM_HEADS = 4
HEAD_SIZE = EMBED_DIM // NUM_HEADS   # 100 (logical, used for the 1/sqrt scale)
HEAD_SIZE_PAD = 128                  # padded to a full lane group
NEG_INF = -1e30


# ----------------------------------------------------------------------------
# Fused kernel: per-batch  QKV projection -> causal attention -> out projection
# ----------------------------------------------------------------------------
def _fused_mha_kernel(x_ref, wqkv_ref, wproj_ref, b_ref, o_ref):
    hsp = HEAD_SIZE_PAD
    x = x_ref[0]                                     # (T, C) bf16
    C = x.shape[1]
    T = x.shape[0]

    # One wide MXU matmul for all of Q, K, V and all heads: (T, 3*H*hsp).
    qkv = jnp.dot(x, wqkv_ref[...],
                  preferred_element_type=jnp.float32).astype(jnp.bfloat16)

    scale = 1.0 / math.sqrt(HEAD_SIZE)               # unpadded head size
    row = lax.broadcasted_iota(jnp.int32, (T, T), 0)
    col = lax.broadcasted_iota(jnp.int32, (T, T), 1)
    causal = col <= row

    acc = jnp.zeros((T, C), jnp.float32)
    for h in range(NUM_HEADS):                       # static unroll, H = 4
        q = qkv[:, h * hsp:(h + 1) * hsp]                                  # (T, hsp)
        k = qkv[:, (NUM_HEADS + h) * hsp:(NUM_HEADS + h + 1) * hsp]        # (T, hsp)
        v = qkv[:, (2 * NUM_HEADS + h) * hsp:(2 * NUM_HEADS + h + 1) * hsp]

        # scores: q @ k^T (padded columns of q/k are zero -> no contribution)
        s = lax.dot_general(q, k, (((1,), (1,)), ((), ())),
                            preferred_element_type=jnp.float32) * scale    # (T, T)
        s = jnp.where(causal, s, NEG_INF)

        # numerically-stable softmax (f32), EUP approx reciprocal for denom
        m = jnp.max(s, axis=-1, keepdims=True)
        p = jnp.exp(s - m)
        p = p * pl.reciprocal(jnp.sum(p, axis=-1, keepdims=True), approx=True)

        head_out = jnp.dot(p.astype(jnp.bfloat16), v,
                           preferred_element_type=jnp.float32)             # (T, hsp)

        # fused output projection: accumulate this head's contribution
        acc = acc + jnp.dot(head_out.astype(jnp.bfloat16), wproj_ref[h],
                            preferred_element_type=jnp.float32)            # (T, C)

    o_ref[0] = (acc + b_ref[...]).astype(o_ref.dtype)


def fused_mha_pallas(x_bf16, w_qkv, w_proj, b_proj):
    """x_bf16: (B, T, C) bf16; w_qkv: (C, 3*H*hsp) bf16;
       w_proj: (H, hsp, C) bf16 (padded rows are zero); b_proj: (1, C) f32."""
    B, T, C = x_bf16.shape
    H, hsp, _ = w_proj.shape

    cost = pl.CostEstimate(
        flops=(2 * B * T * C * 3 * H * hsp          # fused QKV projection
               + 4 * B * H * T * T * hsp            # qk^T and p@v
               + 2 * B * H * T * hsp * C),          # fused output projection
        transcendentals=B * H * T * T,              # exp in softmax
        bytes_accessed=(x_bf16.size * 2 + w_qkv.size * 2 + w_proj.size * 2
                        + b_proj.size * 4 + B * T * C * 4),
    )

    return pl.pallas_call(
        _fused_mha_kernel,
        out_shape=jax.ShapeDtypeStruct((B, T, C), jnp.float32),
        grid_spec=pltpu.PrefetchScalarGridSpec(
            num_scalar_prefetch=0,
            grid=(B,),
            in_specs=[
                pl.BlockSpec((1, T, C), lambda b: (b, 0, 0)),        # x
                pl.BlockSpec((C, 3 * H * hsp), lambda b: (0, 0)),    # fused QKV weight
                pl.BlockSpec((H, hsp, C), lambda b: (0, 0, 0)),      # per-head proj weight
                pl.BlockSpec((1, C), lambda b: (0, 0)),              # proj bias
            ],
            out_specs=pl.BlockSpec((1, T, C), lambda b: (b, 0, 0)),
        ),
        compiler_params=pltpu.CompilerParams(
            dimension_semantics=("parallel",),          # keeps v7x 2-TC sharding
            vmem_limit_bytes=32 * 1024 * 1024,
        ),
        cost_estimate=cost,
    )(x_bf16, w_qkv, w_proj, b_proj)


# ----------------------------------------------------------------------------
# Full forward (matches MultiHeadAttention.forward in eval mode)
# ----------------------------------------------------------------------------
@jax.jit
def mha_forward(x, wq, wk, wv, w_proj_t, b_proj):
    """x: (B, T, C) f32; wq/wk/wv: (H, C, hs) (already x @ W layout);
       w_proj_t: (C, C) (already transposed so y = cat @ w_proj_t); b: (1, C)."""
    B, T, C = x.shape
    H, _, hs = wq.shape
    hsp = HEAD_SIZE_PAD

    # Zero-pad head feature dim 100 -> 128 and stack into one wide QKV weight:
    # column layout is [q_h0 .. q_h3 | k_h0 .. k_h3 | v_h0 .. v_h3], 128 each.
    pad = [(0, 0), (0, 0), (0, hsp - hs)]
    stacked = jnp.concatenate(
        [jnp.pad(wq, pad), jnp.pad(wk, pad), jnp.pad(wv, pad)], axis=0)  # (3H, C, hsp)
    w_qkv = jnp.transpose(stacked, (1, 0, 2)).reshape(C, 3 * H * hsp)
    w_qkv = w_qkv.astype(jnp.bfloat16)

    # Per-head slices of the output projection, zero-padded on the hs rows so
    # the padded lanes of each head's output contribute exactly zero.
    w_proj_heads = w_proj_t.reshape(H, hs, C)
    w_proj_pad = jnp.pad(w_proj_heads, [(0, 0), (0, hsp - hs), (0, 0)])
    w_proj_pad = w_proj_pad.astype(jnp.bfloat16)

    y = fused_mha_pallas(x.astype(jnp.bfloat16), w_qkv, w_proj_pad, b_proj)
    return y


def _reference(x, wq, wk, wv, w_proj_t, b_proj):
    """Pure-JAX f32 reference for verification."""
    B, T, C = x.shape
    outs = []
    for h in range(NUM_HEADS):
        q = x @ wq[h]
        k = x @ wk[h]
        v = x @ wv[h]
        s = (q @ jnp.swapaxes(k, -2, -1)) / math.sqrt(HEAD_SIZE)
        mask = jnp.tril(jnp.ones((T, T), bool))
        s = jnp.where(mask, s, -jnp.inf)
        p = jax.nn.softmax(s, axis=-1)
        outs.append(p @ v)
    cat = jnp.concatenate(outs, axis=-1)
    return cat @ w_proj_t + b_proj


if __name__ == "__main__":
    B, T = 2, 8
    key = jax.random.PRNGKey(0)
    kx, kq, kk, kv, kw, kb = jax.random.split(key, 6)

    x = jax.random.normal(kx, (B, T, EMBED_DIM), dtype=jnp.float32)

    # PyTorch nn.Linear default init: U(-1/sqrt(fan_in), 1/sqrt(fan_in))
    bound = 1.0 / math.sqrt(EMBED_DIM)
    wq = jax.random.uniform(kq, (NUM_HEADS, EMBED_DIM, HEAD_SIZE),
                            minval=-bound, maxval=bound, dtype=jnp.float32)
    wk = jax.random.uniform(kk, (NUM_HEADS, EMBED_DIM, HEAD_SIZE),
                            minval=-bound, maxval=bound, dtype=jnp.float32)
    wv = jax.random.uniform(kv, (NUM_HEADS, EMBED_DIM, HEAD_SIZE),
                            minval=-bound, maxval=bound, dtype=jnp.float32)
    w_proj_t = jax.random.uniform(kw, (EMBED_DIM, EMBED_DIM),
                                  minval=-bound, maxval=bound, dtype=jnp.float32)
    b_proj = jax.random.uniform(kb, (1, EMBED_DIM),
                                minval=-bound, maxval=bound, dtype=jnp.float32)

    y = mha_forward(x, wq, wk, wv, w_proj_t, b_proj)
    y = jax.block_until_ready(y)

    y_ref = _reference(x, wq, wk, wv, w_proj_t, b_proj)
    assert y.shape == (B, T, EMBED_DIM)
    # bf16 matmul operands (f32 accumulation / softmax) -> looser tolerance
    # than the pure-f32 reference.
    assert jnp.allclose(y, y_ref, atol=3e-2, rtol=3e-2), "mismatch vs reference"
    rel = jnp.linalg.norm(y - y_ref) / jnp.linalg.norm(y_ref)
    assert rel < 1e-2, f"relative error too large: {rel}"

    print("KERNEL_OK")
</pallas_src>

<mosaic_0001>
module attributes {stable_mosaic.version = 11 : i64} {
  func.func @_fused_mha_kernel(%arg0: i32, %arg1: memref<1x8x400xbf16, #tpu.memory_space<vmem>>, %arg2: memref<400x1536xbf16, #tpu.memory_space<vmem>>, %arg3: memref<4x128x400xbf16, #tpu.memory_space<vmem>>, %arg4: memref<1x400xf32, #tpu.memory_space<vmem>>, %arg5: memref<1x8x400xf32, #tpu.memory_space<vmem>>) attributes {dimension_semantics = [#tpu.dimension_semantics<parallel>], iteration_bounds = array<i64: 2>, scalar_prefetch = 0 : i64, scratch_operands = 0 : i64, tpu.core_type = #tpu.core_type<tc>, window_params = [{transform_indices = @transform_0, window_bounds = array<i64: 1, 8, 400>}, {pipeline_mode = #tpu.pipeline_mode<synchronous>, transform_indices = @transform_1, window_bounds = array<i64: 400, 1536>}, {pipeline_mode = #tpu.pipeline_mode<synchronous>, transform_indices = @transform_2, window_bounds = array<i64: 4, 128, 400>}, {pipeline_mode = #tpu.pipeline_mode<synchronous>, transform_indices = @transform_3, window_bounds = array<i64: 1, 400>}, {transform_indices = @transform_4, window_bounds = array<i64: 1, 8, 400>}]} {
    %c0 = arith.constant 0 : index
    %c0_0 = arith.constant 0 : index
    %c0_1 = arith.constant 0 : index
    %0 = vector.load %arg1[%c0, %c0_0, %c0_1] : memref<1x8x400xbf16, #tpu.memory_space<vmem>>, vector<1x8x400xbf16>
    %1 = vector.shape_cast %0 : vector<1x8x400xbf16> to vector<8x400xbf16>
    %c0_2 = arith.constant 0 : index
    %c0_3 = arith.constant 0 : index
    %2 = vector.load %arg2[%c0_2, %c0_3] : memref<400x1536xbf16, #tpu.memory_space<vmem>>, vector<400x1536xbf16>
    %cst = arith.constant dense<0.000000e+00> : vector<8x1536xf32>
    %3 = tpu.matmul %1, %2, %cst {dimension_numbers = #tpu.dot_dimension_numbers<[1], [0], [0], [1], [0, 0, 1, 1], [], []>} : vector<8x400xbf16>, vector<400x1536xbf16>, vector<8x1536xf32> -> vector<8x1536xf32>
    %4 = arith.truncf %3 : vector<8x1536xf32> to vector<8x1536xbf16>
    %5 = tpu.iota {dimensions = array<i32: 0>} : vector<8x8xi32>
    %6 = tpu.iota {dimensions = array<i32: 1>} : vector<8x8xi32>
    %7 = arith.cmpi sle, %6, %5 : vector<8x8xi32>
    %cst_4 = arith.constant 0.000000e+00 : f32
    %8 = vector.broadcast %cst_4 : f32 to vector<8x400xf32>
    %9 = vector.extract_strided_slice %4 {offsets = [0, 0], sizes = [8, 128], strides = [1, 1]} : vector<8x1536xbf16> to vector<8x128xbf16>
    %10 = vector.extract_strided_slice %4 {offsets = [0, 512], sizes = [8, 128], strides = [1, 1]} : vector<8x1536xbf16> to vector<8x128xbf16>
    %11 = vector.extract_strided_slice %4 {offsets = [0, 1024], sizes = [8, 128], strides = [1, 1]} : vector<8x1536xbf16> to vector<8x128xbf16>
    %cst_5 = arith.constant dense<0.000000e+00> : vector<8x8xf32>
    %12 = tpu.matmul %9, %10, %cst_5 {dimension_numbers = #tpu.dot_dimension_numbers<[1], [1], [0], [0], [0, 0, 1, 0], [], []>} : vector<8x128xbf16>, vector<8x128xbf16>, vector<8x8xf32> -> vector<8x8xf32>
    %cst_6 = arith.constant 1.000000e-01 : f32
    %13 = vector.broadcast %cst_6 : f32 to vector<8x8xf32>
    %14 = arith.mulf %12, %13 : vector<8x8xf32>
    %cst_7 = arith.constant -1.000000e+30 : f32
    %15 = vector.broadcast %cst_7 : f32 to vector<8x8xf32>
    %16 = arith.select %7, %14, %15 : vector<8x8xi1>, vector<8x8xf32>
    %cst_8 = arith.constant dense<0xFF800000> : vector<8xf32>
    %17 = vector.multi_reduction <maximumf>, %16, %cst_8 [1] : vector<8x8xf32> to vector<8xf32>
    %18 = vector.shape_cast %17 : vector<8xf32> to vector<8x1xf32>
    %19 = vector.broadcast %18 : vector<8x1xf32> to vector<8x8xf32>
    %20 = arith.subf %16, %19 : vector<8x8xf32>
    %21 = math.exp %20 : vector<8x8xf32>
    %cst_9 = arith.constant dense<0.000000e+00> : vector<8xf32>
    %22 = vector.multi_reduction <add>, %21, %cst_9 [1] : vector<8x8xf32> to vector<8xf32>
    %23 = vector.shape_cast %22 : vector<8xf32> to vector<8x1xf32>
    %24 = tpu.reciprocal %23 {approx = true} : vector<8x1xf32> -> vector<8x1xf32>
    %25 = vector.broadcast %24 : vector<8x1xf32> to vector<8x8xf32>
    %26 = arith.mulf %21, %25 : vector<8x8xf32>
    %27 = arith.truncf %26 : vector<8x8xf32> to vector<8x8xbf16>
    %cst_10 = arith.constant dense<0.000000e+00> : vector<8x128xf32>
    %28 = tpu.matmul %27, %11, %cst_10 {dimension_numbers = #tpu.dot_dimension_numbers<[1], [0], [0], [1], [0, 0, 1, 1], [], []>} : vector<8x8xbf16>, vector<8x128xbf16>, vector<8x128xf32> -> vector<8x128xf32>
    %29 = arith.truncf %28 : vector<8x128xf32> to vector<8x128xbf16>
    %c0_11 = arith.constant 0 : index
    %c0_12 = arith.constant 0 : index
    %c0_13 = arith.constant 0 : index
    %30 = vector.load %arg3[%c0_11, %c0_12, %c0_13] : memref<4x128x400xbf16, #tpu.memory_space<vmem>>, vector<1x128x400xbf16>
    %31 = vector.shape_cast %30 : vector<1x128x400xbf16> to vector<128x400xbf16>
    %cst_14 = arith.constant dense<0.000000e+00> : vector<8x400xf32>
    %32 = tpu.matmul %29, %31, %cst_14 {dimension_numbers = #tpu.dot_dimension_numbers<[1], [0], [0], [1], [0, 0, 1, 1], [], []>} : vector<8x128xbf16>, vector<128x400xbf16>, vector<8x400xf32> -> vector<8x400xf32>
    %33 = arith.addf %8, %32 : vector<8x400xf32>
    %34 = vector.extract_strided_slice %4 {offsets = [0, 128], sizes = [8, 128], strides = [1, 1]} : vector<8x1536xbf16> to vector<8x128xbf16>
    %35 = vector.extract_strided_slice %4 {offsets = [0, 640], sizes = [8, 128], strides = [1, 1]} : vector<8x1536xbf16> to vector<8x128xbf16>
    %36 = vector.extract_strided_slice %4 {offsets = [0, 1152], sizes = [8, 128], strides = [1, 1]} : vector<8x1536xbf16> to vector<8x128xbf16>
    %cst_15 = arith.constant dense<0.000000e+00> : vector<8x8xf32>
    %37 = tpu.matmul %34, %35, %cst_15 {dimension_numbers = #tpu.dot_dimension_numbers<[1], [1], [0], [0], [0, 0, 1, 0], [], []>} : vector<8x128xbf16>, vector<8x128xbf16>, vector<8x8xf32> -> vector<8x8xf32>
    %cst_16 = arith.constant 1.000000e-01 : f32
    %38 = vector.broadcast %cst_16 : f32 to vector<8x8xf32>
    %39 = arith.mulf %37, %38 : vector<8x8xf32>
    %cst_17 = arith.constant -1.000000e+30 : f32
    %40 = vector.broadcast %cst_17 : f32 to vector<8x8xf32>
    %41 = arith.select %7, %39, %40 : vector<8x8xi1>, vector<8x8xf32>
    %cst_18 = arith.constant dense<0xFF800000> : vector<8xf32>
    %42 = vector.multi_reduction <maximumf>, %41, %cst_18 [1] : vector<8x8xf32> to vector<8xf32>
    %43 = vector.shape_cast %42 : vector<8xf32> to vector<8x1xf32>
    %44 = vector.broadcast %43 : vector<8x1xf32> to vector<8x8xf32>
    %45 = arith.subf %41, %44 : vector<8x8xf32>
    %46 = math.exp %45 : vector<8x8xf32>
    %cst_19 = arith.constant dense<0.000000e+00> : vector<8xf32>
    %47 = vector.multi_reduction <add>, %46, %cst_19 [1] : vector<8x8xf32> to vector<8xf32>
    %48 = vector.shape_cast %47 : vector<8xf32> to vector<8x1xf32>
    %49 = tpu.reciprocal %48 {approx = true} : vector<8x1xf32> -> vector<8x1xf32>
    %50 = vector.broadcast %49 : vector<8x1xf32> to vector<8x8xf32>
    %51 = arith.mulf %46, %50 : vector<8x8xf32>
    %52 = arith.truncf %51 : vector<8x8xf32> to vector<8x8xbf16>
    %cst_20 = arith.constant dense<0.000000e+00> : vector<8x128xf32>
    %53 = tpu.matmul %52, %36, %cst_20 {dimension_numbers = #tpu.dot_dimension_numbers<[1], [0], [0], [1], [0, 0, 1, 1], [], []>} : vector<8x8xbf16>, vector<8x128xbf16>, vector<8x128xf32> -> vector<8x128xf32>
    %54 = arith.truncf %53 : vector<8x128xf32> to vector<8x128xbf16>
    %c1 = arith.constant 1 : index
    %c0_21 = arith.constant 0 : index
    %c0_22 = arith.constant 0 : index
    %55 = vector.load %arg3[%c1, %c0_21, %c0_22] : memref<4x128x400xbf16, #tpu.memory_space<vmem>>, vector<1x128x400xbf16>
    %56 = vector.shape_cast %55 : vector<1x128x400xbf16> to vector<128x400xbf16>
    %cst_23 = arith.constant dense<0.000000e+00> : vector<8x400xf32>
    %57 = tpu.matmul %54, %56, %cst_23 {dimension_numbers = #tpu.dot_dimension_numbers<[1], [0], [0], [1], [0, 0, 1, 1], [], []>} : vector<8x128xbf16>, vector<128x400xbf16>, vector<8x400xf32> -> vector<8x400xf32>
    %58 = arith.addf %33, %57 : vector<8x400xf32>
    %59 = vector.extract_strided_slice %4 {offsets = [0, 256], sizes = [8, 128], strides = [1, 1]} : vector<8x1536xbf16> to vector<8x128xbf16>
    %60 = vector.extract_strided_slice %4 {offsets = [0, 768], sizes = [8, 128], strides = [1, 1]} : vector<8x1536xbf16> to vector<8x128xbf16>
    %61 = vector.extract_strided_slice %4 {offsets = [0, 1280], sizes = [8, 128], strides = [1, 1]} : vector<8x1536xbf16> to vector<8x128xbf16>
    %cst_24 = arith.constant dense<0.000000e+00> : vector<8x8xf32>
    %62 = tpu.matmul %59, %60, %cst_24 {dimension_numbers = #tpu.dot_dimension_numbers<[1], [1], [0], [0], [0, 0, 1, 0], [], []>} : vector<8x128xbf16>, vector<8x128xbf16>, vector<8x8xf32> -> vector<8x8xf32>
    %cst_25 = arith.constant 1.000000e-01 : f32
    %63 = vector.broadcast %cst_25 : f32 to vector<8x8xf32>
    %64 = arith.mulf %62, %63 : vector<8x8xf32>
    %cst_26 = arith.constant -1.000000e+30 : f32
    %65 = vector.broadcast %cst_26 : f32 to vector<8x8xf32>
    %66 = arith.select %7, %64, %65 : vector<8x8xi1>, vector<8x8xf32>
    %cst_27 = arith.constant dense<0xFF800000> : vector<8xf32>
    %67 = vector.multi_reduction <maximumf>, %66, %cst_27 [1] : vector<8x8xf32> to vector<8xf32>
    %68 = vector.shape_cast %67 : vector<8xf32> to vector<8x1xf32>
    %69 = vector.broadcast %68 : vector<8x1xf32> to vector<8x8xf32>
    %70 = arith.subf %66, %69 : vector<8x8xf32>
    %71 = math.exp %70 : vector<8x8xf32>
    %cst_28 = arith.constant dense<0.000000e+00> : vector<8xf32>
    %72 = vector.multi_reduction <add>, %71, %cst_28 [1] : vector<8x8xf32> to vector<8xf32>
    %73 = vector.shape_cast %72 : vector<8xf32> to vector<8x1xf32>
    %74 = tpu.reciprocal %73 {approx = true} : vector<8x1xf32> -> vector<8x1xf32>
    %75 = vector.broadcast %74 : vector<8x1xf32> to vector<8x8xf32>
    %76 = arith.mulf %71, %75 : vector<8x8xf32>
    %77 = arith.truncf %76 : vector<8x8xf32> to vector<8x8xbf16>
    %cst_29 = arith.constant dense<0.000000e+00> : vector<8x128xf32>
    %78 = tpu.matmul %77, %61, %cst_29 {dimension_numbers = #tpu.dot_dimension_numbers<[1], [0], [0], [1], [0, 0, 1, 1], [], []>} : vector<8x8xbf16>, vector<8x128xbf16>, vector<8x128xf32> -> vector<8x128xf32>
    %79 = arith.truncf %78 : vector<8x128xf32> to vector<8x128xbf16>
    %c2 = arith.constant 2 : index
    %c0_30 = arith.constant 0 : index
    %c0_31 = arith.constant 0 : index
    %80 = vector.load %arg3[%c2, %c0_30, %c0_31] : memref<4x128x400xbf16, #tpu.memory_space<vmem>>, vector<1x128x400xbf16>
    %81 = vector.shape_cast %80 : vector<1x128x400xbf16> to vector<128x400xbf16>
    %cst_32 = arith.constant dense<0.000000e+00> : vector<8x400xf32>
    %82 = tpu.matmul %79, %81, %cst_32 {dimension_numbers = #tpu.dot_dimension_numbers<[1], [0], [0], [1], [0, 0, 1, 1], [], []>} : vector<8x128xbf16>, vector<128x400xbf16>, vector<8x400xf32> -> vector<8x400xf32>
    %83 = arith.addf %58, %82 : vector<8x400xf32>
    %84 = vector.extract_strided_slice %4 {offsets = [0, 384], sizes = [8, 128], strides = [1, 1]} : vector<8x1536xbf16> to vector<8x128xbf16>
    %85 = vector.extract_strided_slice %4 {offsets = [0, 896], sizes = [8, 128], strides = [1, 1]} : vector<8x1536xbf16> to vector<8x128xbf16>
    %86 = vector.extract_strided_slice %4 {offsets = [0, 1408], sizes = [8, 128], strides = [1, 1]} : vector<8x1536xbf16> to vector<8x128xbf16>
    %cst_33 = arith.constant dense<0.000000e+00> : vector<8x8xf32>
    %87 = tpu.matmul %84, %85, %cst_33 {dimension_numbers = #tpu.dot_dimension_numbers<[1], [1], [0], [0], [0, 0, 1, 0], [], []>} : vector<8x128xbf16>, vector<8x128xbf16>, vector<8x8xf32> -> vector<8x8xf32>
    %cst_34 = arith.constant 1.000000e-01 : f32
    %88 = vector.broadcast %cst_34 : f32 to vector<8x8xf32>
    %89 = arith.mulf %87, %88 : vector<8x8xf32>
    %cst_35 = arith.constant -1.000000e+30 : f32
    %90 = vector.broadcast %cst_35 : f32 to vector<8x8xf32>
    %91 = arith.select %7, %89, %90 : vector<8x8xi1>, vector<8x8xf32>
    %cst_36 = arith.constant dense<0xFF800000> : vector<8xf32>
    %92 = vector.multi_reduction <maximumf>, %91, %cst_36 [1] : vector<8x8xf32> to vector<8xf32>
    %93 = vector.shape_cast %92 : vector<8xf32> to vector<8x1xf32>
    %94 = vector.broadcast %93 : vector<8x1xf32> to vector<8x8xf32>
    %95 = arith.subf %91, %94 : vector<8x8xf32>
    %96 = math.exp %95 : vector<8x8xf32>
    %cst_37 = arith.constant dense<0.000000e+00> : vector<8xf32>
    %97 = vector.multi_reduction <add>, %96, %cst_37 [1] : vector<8x8xf32> to vector<8xf32>
    %98 = vector.shape_cast %97 : vector<8xf32> to vector<8x1xf32>
    %99 = tpu.reciprocal %98 {approx = true} : vector<8x1xf32> -> vector<8x1xf32>
    %100 = vector.broadcast %99 : vector<8x1xf32> to vector<8x8xf32>
    %101 = arith.mulf %96, %100 : vector<8x8xf32>
    %102 = arith.truncf %101 : vector<8x8xf32> to vector<8x8xbf16>
    %cst_38 = arith.constant dense<0.000000e+00> : vector<8x128xf32>
    %103 = tpu.matmul %102, %86, %cst_38 {dimension_numbers = #tpu.dot_dimension_numbers<[1], [0], [0], [1], [0, 0, 1, 1], [], []>} : vector<8x8xbf16>, vector<8x128xbf16>, vector<8x128xf32> -> vector<8x128xf32>
    %104 = arith.truncf %103 : vector<8x128xf32> to vector<8x128xbf16>
    %c3 = arith.constant 3 : index
    %c0_39 = arith.constant 0 : index
    %c0_40 = arith.constant 0 : index
    %105 = vector.load %arg3[%c3, %c0_39, %c0_40] : memref<4x128x400xbf16, #tpu.memory_space<vmem>>, vector<1x128x400xbf16>
    %106 = vector.shape_cast %105 : vector<1x128x400xbf16> to vector<128x400xbf16>
    %cst_41 = arith.constant dense<0.000000e+00> : vector<8x400xf32>
    %107 = tpu.matmul %104, %106, %cst_41 {dimension_numbers = #tpu.dot_dimension_numbers<[1], [0], [0], [1], [0, 0, 1, 1], [], []>} : vector<8x128xbf16>, vector<128x400xbf16>, vector<8x400xf32> -> vector<8x400xf32>
    %108 = arith.addf %83, %107 : vector<8x400xf32>
    %c0_42 = arith.constant 0 : index
    %c0_43 = arith.constant 0 : index
    %109 = vector.load %arg4[%c0_42, %c0_43] : memref<1x400xf32, #tpu.memory_space<vmem>>, vector<1x400xf32>
    %110 = vector.broadcast %109 : vector<1x400xf32> to vector<8x400xf32>
    %111 = arith.addf %108, %110 : vector<8x400xf32>
    %c0_44 = arith.constant 0 : index
    %c0_45 = arith.constant 0 : index
    %c0_46 = arith.constant 0 : index
    %112 = vector.load %arg5[%c0_44, %c0_45, %c0_46] : memref<1x8x400xf32, #tpu.memory_space<vmem>>, vector<1x8x400xf32>
    %113 = vector.shape_cast %112 : vector<1x8x400xf32> to vector<8x400xf32>
    %114 = vector.shape_cast %111 : vector<8x400xf32> to vector<1x8x400xf32>
    tpu.vector_store %arg5[%c0_44, %c0_45, %c0_46], %114 {strides = array<i32>} : memref<1x8x400xf32, #tpu.memory_space<vmem>>, vector<1x8x400xf32>,
    return
  }
  func.func @transform_0(%arg0: i32) -> (i32, i32, i32) {
    %c0_i32 = arith.constant 0 : i32
    %c0_i32_0 = arith.constant 0 : i32
    %c0_i32_1 = arith.constant 0 : i32
    return %arg0, %c0_i32, %c0_i32_0 : i32, i32, i32
  }
  func.func @transform_1(%arg0: i32) -> (i32, i32) {
    %c0_i32 = arith.constant 0 : i32
    %c0_i32_0 = arith.constant 0 : i32
    %c0_i32_1 = arith.constant 0 : i32
    return %c0_i32, %c0_i32_0 : i32, i32
  }
  func.func @transform_2(%arg0: i32) -> (i32, i32, i32) {
    %c0_i32 = arith.constant 0 : i32
    %c0_i32_0 = arith.constant 0 : i32
    %c0_i32_1 = arith.constant 0 : i32
    %c0_i32_2 = arith.constant 0 : i32
    return %c0_i32, %c0_i32_0, %c0_i32_1 : i32, i32, i32
  }
  func.func @transform_3(%arg0: i32) -> (i32, i32) {
    %c0_i32 = arith.constant 0 : i32
    %c0_i32_0 = arith.constant 0 : i32
    %c0_i32_1 = arith.constant 0 : i32
    return %c0_i32, %c0_i32_0 : i32, i32
  }
  func.func @transform_4(%arg0: i32) -> (i32, i32, i32) {
    %c0_i32 = arith.constant 0 : i32
    %c0_i32_0 = arith.constant 0 : i32
    %c0_i32_1 = arith.constant 0 : i32
    return %arg0, %c0_i32, %c0_i32_0 : i32, i32, i32
  }
}

</mosaic_0001>

<bundles_post_ra>
// kernel: mha_forward.1
= control target key start
LH: loop header
LB: loop body
LE: loop exit
PB: predicated region body
PF: predicated region fallthrough
CT: control target
= control target key end

     0   :  { %9 = vsyncpa [#allocation3], 0  ;;  %s7120_s0 = inlined_call_operand.vmem [shape: bf16[2,8,400], index: 0, kind: input, shape index: {}]   ;;  %s7121_s1 = inlined_call_operand.vmem [shape: bf16[400,1536], index: 1, kind: input, shape index: {}]   ;;  %s7122_s2 = inlined_call_operand.vmem [shape: bf16[4,128,400], index: 2, kind: input, shape index: {}]   ;;  %s7123_s3 = inlined_call_operand.vmem [shape: f32[1,400], index: 3, kind: input, shape index: {}]   ;;  %s7124_s4 = inlined_call_operand.hbm [shape: f32[2,8,400], index: 4, kind: output, shape index: {}]  }
   0x1   :  { %11 = vsyncpa [#allocation3 + $0x1], 0  ;;  %s5553_s15 = smov 0   ;;  %s5555_s16 = smov 0  }
   0x2   :  { %s5557_s17 = smov 0   ;;  %s5559_s18 = smov 0  }
   0x3 LB: > { %s5574_s19 = sadd.s32 4294967295, %s5522_s18   ;;  %s4142_s20 = sadd.s32 4294967294, %s5522_s18   ;;  %s5522_s18 = sphi %s5559_s18, %s7130_s18   ;;  %s5518_s17 = sphi %s5557_s17, %s7129_s17   ;;  %s5514_s16 = sphi %s5555_s16, %s7128_s16   ;;  %s5510_s15 = sphi %s5553_s15, %s7127_s15  }
   0x4   : > { %s5578_s21 = sadd.s32 1, %s5522_s18   ;;  %s113_s22 = sadd.s32 1, %s5518_s17 }
   0x5   : > { %s110_s23 = ssub.s32 %s5522_s18, %s5578_s21  ;;  %p123_p0 = scmp.ne.s32.totalorder %s5518_s17, %s5514_s16 }
   0x6   : > { %p111_p1 = scmp.eq.s32.totalorder %s110_s23, 0  ;;  %p124_p2 = scmp.eq.s32.totalorder %s5574_s19, 1 }
   0x7   : > { %p129_p3 = scmp.ne.s32.totalorder %s5514_s16, %s5510_s15  ;;  %p130_p4 = scmp.eq.s32.totalorder %s4142_s20, 1 }
   0x8   : > { %s5589_s24 = scalar_select %p111_p1, %s5518_s17, %s113_s22  }
   0x9   : > { %p5591_p5 = por %p124_p2, %p123_p0  ;;  %p5595_p6 = por %p130_p4, %p129_p3 }
   0xa   : > { %p4145_p7 = scmp.ge.s32.totalorder %s5522_s18, 1  ;;  %p165_p8 = scmp.lt.s32.totalorder %s5522_s18, 3 }
   0xc   : > { %p166_p9 = pnand %p4145_p7, %p165_p8 }
   0xd   : > { %p191_p10 = scmp.lt.s32.totalorder (!%p166_p9), %s5574_s19, 1  ;;  %s188_s20 = sand.u32 (!%p166_p9), 1, %s5514_s16  }
   0xe   : > { %169 = sbr.rel (%p166_p9) target bundleno = 2771 (0xad3), region = 36  ;;  %s4693_s27 = sshll.u32 (!%p166_p9), %s5574_s19, 9 }
   0xf   : > { %s4069_s5 = scalar_lea.sflag (!%p166_p9), [#allocation3], %s188_s20  ;;  %s5527_s8 = smov (!%p166_p9), [#allocation2]  }
  0x10   : > { %s5466_s9 = sshll.u32 (!%p166_p9), %s5527_s8, 4  ;;  %s5467_s9 = int_to_ptr.vmem [resolvable:$false] %s5466_s9 }
  0x11   : > { %s5468_s10 = scalar_lea.vmem (!%p166_p9), %s5467_s9, 1024 }
  0x13   : > { %v4800_v0 = vld [vmem:[%s7121_s1 + $0x2a4] ss:$48 sps:$4 sm:$0xff]   ;;  %v4804_v2 = vld [vmem:[%s7121_s1 + $0x2a0] ss:$48 sps:$4 sm:$0xff]   ;;  %s192_s7 = scalar_select %p191_p10, %s5574_s19, 1  ;;  %vm2012_vm0 = vcmask 130048  }
  0x14   : > { %v4802_v1 = vld [vmem:[%s7121_s1 + $0x8a4] ss:$48 sps:$4 sm:$0xff]   ;;  %2016 = vmatprep.subr.bf16.mxu0 %v4800_v0  ;;  %v4805_v3 = vld [vmem:[%s7121_s1 + $0x8a0] ss:$48 sps:$4 sm:$0xff]   ;;  %v4859_v39 = vld [vmem:[%s7121_s1 + $0x2ac] ss:$48 sps:$4 sm:$0xff]   ;;  %s7076_s19 = scalar_lea.hbm %s7124_s4, %s4693_s27 }
  0x15   : > { %2057 = vmatprep.subr.bf16.mxu1 %v4802_v1  ;;  %v4806_v4 = vld [vmem:[%s7121_s1 + $0x244] ss:$48 sps:$4 sm:$0xff]   ;;  %2017 = vmatpush1.bf16.msra.mxu0 %v4804_v2  ;;  %v4810_v6 = vld [vmem:[%s7121_s1 + $0x240] ss:$48 sps:$4 sm:$0xff]   ;;  %s4692_s14 = sshll.u32 %s192_s7, 4  ;;  %vm5525_vm1 = vmmov 0  }
  0x16   : > { %2058 = vmatpush1.bf16.msra.mxu1 %v4805_v3  ;;  %v4808_v5 = vld [vmem:[%s7121_s1 + $0x844] ss:$48 sps:$4 sm:$0xff]   ;;  %2018 = vmatprep.subr.bf16.mxu0 %v4806_v4  ;;  %v4811_v7 = vld [vmem:[%s7121_s1 + $0x840] ss:$48 sps:$4 sm:$0xff]   ;;  %s5684_s6 = scalar_lea.vmem %s7120_s0, %s4692_s14  ;;  %v4857_v40 = vld [vmem:[%s7121_s1 + $0x2a8] ss:$48 sps:$4 sm:$0xff]  }
  0x17   : > { %2059 = vmatprep.subr.bf16.mxu1 %v4808_v5  ;;  %v4812_v8 = vld [vmem:[%s7121_s1 + $0x1e4] ss:$48 sps:$4 sm:$0xff]   ;;  %v4816_v10 = vld [vmem:[%s7121_s1 + $0x1e0] ss:$48 sps:$4 sm:$0xff]   ;;  %v198_v30 = vld [vmem:[%s5684_s6 + $0x8] sm:$0xff]  ;;  %vm2583_vm2 = vcmask 1043456  }
  0x18   : > { %v4814_v9 = vld [vmem:[%s7121_s1 + $0x7e4] ss:$48 sps:$4 sm:$0xff]   ;;  %v4817_v11 = vld [vmem:[%s7121_s1 + $0x7e0] ss:$48 sps:$4 sm:$0xff]   ;;  %v5699_v31 = vcombine.high %v198_v30, %v198_v30  ;;  %v5730_v41 = vcombine.low %v198_v30, %v198_v30  ;;  %v4866_v44 = vld [vmem:[%s7121_s1 + $0x24c] ss:$48 sps:$4 sm:$0xff]  }
  0x19   : > { %2019 = vmatpush1.bf16.msra.mxu0 %v4810_v6  ;;  %v4818_v12 = vld [vmem:[%s7121_s1 + $0x184] ss:$48 sps:$4 sm:$0xff]   ;;  %v4822_v14 = vld [vmem:[%s7121_s1 + $0x180] ss:$48 sps:$4 sm:$0xff]   ;;  %v4864_v45 = vld [vmem:[%s7121_s1 + $0x248] ss:$48 sps:$4 sm:$0xff]  }
  0x1a   : > { %2060 = vmatpush1.bf16.msra.mxu1 %v4811_v7  ;;  %2020 = vmatprep.subr.bf16.mxu0 %v4812_v8  ;;  %v4820_v13 = vld [vmem:[%s7121_s1 + $0x784] ss:$48 sps:$4 sm:$0xff]   ;;  %v4823_v15 = vld [vmem:[%s7121_s1 + $0x780] ss:$48 sps:$4 sm:$0xff]   ;;  %v4872_v48 = vld [vmem:[%s7121_s1 + $0x1ec] ss:$48 sps:$4 sm:$0xff]  }
  0x1b   : > { %2061 = vmatprep.subr.bf16.mxu1 %v4814_v9  ;;  %v4824_v16 = vld [vmem:[%s7121_s1 + $0x124] ss:$48 sps:$4 sm:$0xff]   ;;  %v4828_v18 = vld [vmem:[%s7121_s1 + $0x120] ss:$48 sps:$4 sm:$0xff]   ;;  %4453 = vmatprep.mubr.msk.bf16.mxu1 %vm2012_vm0, %v5699_v31  ;;  %v4870_v50 = vld [vmem:[%s7121_s1 + $0x1e8] ss:$48 sps:$4 sm:$0xff]  }
  0x1c   : > { %v4826_v17 = vld [vmem:[%s7121_s1 + $0x724] ss:$48 sps:$4 sm:$0xff]   ;;  %v4829_v19 = vld [vmem:[%s7121_s1 + $0x720] ss:$48 sps:$4 sm:$0xff]   ;;  %v4878_v54 = vld [vmem:[%s7121_s1 + $0x18c] ss:$48 sps:$4 sm:$0xff]  }
  0x1d   : > { %2021 = vmatpush1.bf16.msra.mxu0 %v4816_v10  ;;  %v4830_v20 = vld [vmem:[%s7121_s1 + $0xc4] ss:$48 sps:$4 sm:$0xff]   ;;  %v4834_v22 = vld [vmem:[%s7121_s1 + $0xc0] ss:$48 sps:$4 sm:$0xff]   ;;  %v4876_v55 = vld [vmem:[%s7121_s1 + $0x188] ss:$48 sps:$4 sm:$0xff]  }
  0x1e   : > { %2062 = vmatpush1.bf16.msra.mxu1 %v4817_v11  ;;  %2022 = vmatprep.subr.bf16.mxu0 %v4818_v12  ;;  %v4832_v21 = vld [vmem:[%s7121_s1 + $0x6c4] ss:$48 sps:$4 sm:$0xff]   ;;  %v4835_v23 = vld [vmem:[%s7121_s1 + $0x6c0] ss:$48 sps:$4 sm:$0xff]   ;;  %v4884_v58 = vld [vmem:[%s7121_s1 + $0x12c] ss:$48 sps:$4 sm:$0xff]  }
  0x1f   : > { %2063 = vmatprep.subr.bf16.mxu1 %v4820_v13  ;;  %v4836_v24 = vld [vmem:[%s7121_s1 + $0x64] ss:$48 sps:$4 sm:$0xff]   ;;  %v4840_v26 = vld [vmem:[%s7121_s1 + $0x60] ss:$48 sps:$4 sm:$0xff]   ;;  %v4882_v59 = vld [vmem:[%s7121_s1 + $0x128] ss:$48 sps:$4 sm:$0xff]  }
  0x20   : > { %v4838_v25 = vld [vmem:[%s7121_s1 + $0x664] ss:$48 sps:$4 sm:$0xff]   ;;  %v4841_v27 = vld [vmem:[%s7121_s1 + $0x660] ss:$48 sps:$4 sm:$0xff]   ;;  %v4890_v62 = vld [vmem:[%s7121_s1 + $0xcc] ss:$48 sps:$4 sm:$0xff]  }
  0x21   : > { %2023 = vmatpush1.bf16.msra.mxu0 %v4822_v14  ;;  %v4842_v28 = vld [vmem:[%s7121_s1 + $0x4] ss:$48 sps:$4 sm:$0xff]   ;;  %v4846_v32 = vld [vmem:[%s7121_s1] ss:$48 sps:$4 sm:$0xff]   ;;  %v4888_v63 = vld [vmem:[%s7121_s1 + $0xc8] ss:$48 sps:$4 sm:$0xff]  }
  0x22   : > { %2064 = vmatpush1.bf16.msra.mxu1 %v4823_v15  ;;  %2024 = vmatprep.subr.bf16.mxu0 %v4824_v16  ;;  %v4844_v29 = vld [vmem:[%s7121_s1 + $0x604] ss:$48 sps:$4 sm:$0xff]   ;;  %v4847_v33 = vld [vmem:[%s7121_s1 + $0x600] ss:$48 sps:$4 sm:$0xff]   ;;  %v4896_v2 = vld [vmem:[%s7121_s1 + $0x6c] ss:$48 sps:$4 sm:$0xff]  }
  0x23   : > { %2065 = vmatprep.subr.bf16.mxu1 %v4826_v17  ;;  %v4848_v34 = vld [vmem:[%s7121_s1 + $0x5a4] ss:$48 sps:$4 sm:$0xff]   ;;  %v4852_v36 = vld [vmem:[%s7121_s1 + $0x5a0] ss:$48 sps:$4 sm:$0xff]   ;;  %v4894_v3 = vld [vmem:[%s7121_s1 + $0x68] ss:$48 sps:$4 sm:$0xff]  }
  0x24   : > { %v4850_v35 = vld [vmem:[%s7121_s1 + $0x904] ss:$48 sps:$4 sm:$0xff]   ;;  %v4853_v37 = vld [vmem:[%s7121_s1 + $0x900] ss:$48 sps:$4 sm:$0xff]   ;;  %v4902_v5 = vld [vmem:[%s7121_s1 + $0xc] ss:$48 sps:$4 sm:$0xff]  }
  0x25   : > { %2025 = vmatpush1.bf16.msra.mxu0 %v4828_v18  ;;  %v4854_v38 = vld [vmem:[%s7121_s1 + $0x544] ss:$48 sps:$4 sm:$0xff]   ;;  %v4860_v42 = vld [vmem:[%s7121_s1 + $0x540] ss:$48 sps:$4 sm:$0xff]   ;;  %v4905_v6 = vld [vmem:[%s7121_s1 + $0x8ac] ss:$48 sps:$4 sm:$0xff]  }
  0x26   : > { %2066 = vmatpush1.bf16.msra.mxu1 %v4829_v19  ;;  %2026 = vmatprep.subr.bf16.mxu0 %v4830_v20  ;;  %v4862_v43 = vld [vmem:[%s7121_s1 + $0x4e4] ss:$48 sps:$4 sm:$0xff]   ;;  %v4867_v46 = vld [vmem:[%s7121_s1 + $0x4e0] ss:$48 sps:$4 sm:$0xff]   ;;  %v4900_v8 = vld [vmem:[%s7121_s1 + $0x8] ss:$48 sps:$4 sm:$0xff]  }
  0x27   : > { %2067 = vmatprep.subr.bf16.mxu1 %v4832_v21  ;;  %v4868_v47 = vld [vmem:[%s7121_s1 + $0x484] ss:$48 sps:$4 sm:$0xff]   ;;  %v4873_v51 = vld [vmem:[%s7121_s1 + $0x480] ss:$48 sps:$4 sm:$0xff]   ;;  %v4903_v9 = vld [vmem:[%s7121_s1 + $0x8a8] ss:$48 sps:$4 sm:$0xff]  }
  0x28   : > { %v197_v49 = vld [vmem:[%s5684_s6] sm:$0xff]  ;;  %v4908_v10 = vld [vmem:[%s7121_s1 + $0x5ac] ss:$48 sps:$4 sm:$0xff]   ;;  %v4906_v12 = vld [vmem:[%s7121_s1 + $0x5a8] ss:$48 sps:$4 sm:$0xff]   ;;  %vm2567_vm4 = vcmask 64512  }
  0x29   : > { %2027 = vmatpush1.bf16.msra.mxu0 %v4834_v22  ;;  %v5761_v52 = vcombine.high %v197_v49, %v197_v49  ;;  %v4874_v53 = vld [vmem:[%s7121_s1 + $0x424] ss:$48 sps:$4 sm:$0xff]   ;;  %v4879_v56 = vld [vmem:[%s7121_s1 + $0x420] ss:$48 sps:$4 sm:$0xff]   ;;  %v5819_v7 = vcombine.low %v197_v49, %v197_v49  ;;  %v4911_v11 = vld [vmem:[%s7121_s1 + $0x84c] ss:$48 sps:$4 sm:$0xff]  }
  0x2a   : > { %2068 = vmatpush1.bf16.msra.mxu1 %v4835_v23  ;;  %2028 = vmatprep.subr.bf16.mxu0 %v4836_v24  ;;  %v4880_v57 = vld [vmem:[%s7121_s1 + $0x3c4] ss:$48 sps:$4 sm:$0xff]   ;;  %v4885_v60 = vld [vmem:[%s7121_s1 + $0x3c0] ss:$48 sps:$4 sm:$0xff]   ;;  %v4909_v13 = vld [vmem:[%s7121_s1 + $0x848] ss:$48 sps:$4 sm:$0xff]  }
  0x2b   : > { %2069 = vmatprep.subr.bf16.mxu1 %v4838_v25  ;;  %2048 = vmatprep.mubr.bf16.mxu0 %v5761_v52  ;;  %v4886_v61 = vld [vmem:[%s7121_s1 + $0x364] ss:$48 sps:$4 sm:$0xff]   ;;  %v4891_v0 = vld [vmem:[%s7121_s1 + $0x360] ss:$48 sps:$4 sm:$0xff]   ;;  %v4914_v14 = vld [vmem:[%s7121_s1 + $0x54c] ss:$48 sps:$4 sm:$0xff]  }
  0x2c   : > { %v4892_v1 = vld [vmem:[%s7121_s1 + $0x304] ss:$48 sps:$4 sm:$0xff]   ;;  %v4897_v4 = vld [vmem:[%s7121_s1 + $0x300] ss:$48 sps:$4 sm:$0xff]   ;;  %v4917_v15 = vld [vmem:[%s7121_s1 + $0x7ec] ss:$48 sps:$4 sm:$0xff]  }
  0x2d   : > { %2029 = vmatpush1.bf16.msra.mxu0 %v4840_v26  ;;  %v4912_v16 = vld [vmem:[%s7121_s1 + $0x548] ss:$48 sps:$4 sm:$0xff]   ;;  %v4920_v18 = vld [vmem:[%s7121_s1 + $0x4ec] ss:$48 sps:$4 sm:$0xff]   ;;  %v4980_v49 = vld [vmem:[%s7121_s1 + $0x854] ss:$48 sps:$4 sm:$0xff]  }
  0x2e   : > { %2070 = vmatpush1.bf16.msra.mxu1 %v4841_v27  ;;  %2030 = vmatprep.subr.bf16.mxu0 %v4842_v28  ;;  %v4915_v17 = vld [vmem:[%s7121_s1 + $0x7e8] ss:$48 sps:$4 sm:$0xff]   ;;  %v4923_v19 = vld [vmem:[%s7121_s1 + $0x78c] ss:$48 sps:$4 sm:$0xff]   ;;  %s4146_s14 = sshll.u32 %s188_s20, 5 }
  0x2f   : > { %2071 = vmatprep.subr.bf16.mxu1 %v4844_v29  ;;  %v4918_v20 = vld [vmem:[%s7121_s1 + $0x4e8] ss:$48 sps:$4 sm:$0xff]   ;;  %v4926_v22 = vld [vmem:[%s7121_s1 + $0x48c] ss:$48 sps:$4 sm:$0xff]   ;;  %s190_s28 = scalar_lea.vmem [#allocation2], %s4146_s14 }
  0x30   : > { %v4921_v21 = vld [vmem:[%s7121_s1 + $0x788] ss:$48 sps:$4 sm:$0xff]   ;;  %v4929_v23 = vld [vmem:[%s7121_s1 + $0x72c] ss:$48 sps:$4 sm:$0xff]   ;;  %s4083_s29 = sshll.u32 %s190_s28, 4  ;;  %s7078_s29 = int_to_ptr.vmem [resolvable:$true] %s4083_s29 }
  0x31   : > { %2031 = vmatpush1.bf16.msra.mxu0 %v4846_v32  ;;  %v4924_v24 = vld [vmem:[%s7121_s1 + $0x488] ss:$48 sps:$4 sm:$0xff]   ;;  %v4932_v26 = vld [vmem:[%s7121_s1 + $0x42c] ss:$48 sps:$4 sm:$0xff]   ;;  %s5462_s7 = scalar_lea.vmem %s7078_s29, 512  ;;  %p5469_p0 = scmp.lt.s32.totalorder %s7078_s29, %s5467_s9 }
  0x32   : > { %2072 = vmatpush1.bf16.msra.mxu1 %v4847_v33  ;;  %2032 = vmatprep.subr.bf16.mxu0 %v4848_v34  ;;  %v4927_v25 = vld [vmem:[%s7121_s1 + $0x728] ss:$48 sps:$4 sm:$0xff]   ;;  %v4935_v27 = vld [vmem:[%s7121_s1 + $0x6cc] ss:$48 sps:$4 sm:$0xff]   ;;  %p5463_p11 = scmp.ne.s32.totalorder %s7078_s29, %s5462_s7  ;;  %p5470_p1 = scmp.lt.s32.totalorder %s5468_s10, %s5462_s7 }
  0x33   : > { %2087 = vmatprep.subr.bf16.mxu1 %v4850_v35  ;;  %v4930_v28 = vld [vmem:[%s7121_s1 + $0x428] ss:$48 sps:$4 sm:$0xff]   ;;  %v4938_v30 = vld [vmem:[%s7121_s1 + $0x3cc] ss:$48 sps:$4 sm:$0xff]  }
  0x34   : > { %v4933_v29 = vld [vmem:[%s7121_s1 + $0x6c8] ss:$48 sps:$4 sm:$0xff]   ;;  %v4941_v32 = vld [vmem:[%s7121_s1 + $0x66c] ss:$48 sps:$4 sm:$0xff]   ;;  %p5464_p12 = pnand %p5463_p11, %p5591_p5  ;;  %p5471_p2 = por %p5470_p1, %p5469_p0 }
  0x35   : > { %2033 = vmatpush2.bf16.msra.mxu0 %v4852_v36  ;;  %v4936_v33 = vld [vmem:[%s7121_s1 + $0x3c8] ss:$48 sps:$4 sm:$0xff]   ;;  %v4944_v35 = vld [vmem:[%s7121_s1 + $0x36c] ss:$48 sps:$4 sm:$0xff]  }
  0x36   : > { %2088 = vmatpush2.bf16.msra.mxu1 %v4853_v37  ;;  %2034 = vmatprep.subr.bf16.mxu0 %v4854_v38  ;;  %v4939_v34 = vld [vmem:[%s7121_s1 + $0x668] ss:$48 sps:$4 sm:$0xff]   ;;  %v4947_v36 = vld [vmem:[%s7121_s1 + $0x60c] ss:$48 sps:$4 sm:$0xff]   ;;  %p5465_p13 = pneg %p5464_p12 }
  0x37   : > { %2098 = vmatprep.subr.bf16.mxu1 %v4859_v39  ;;  %v4942_v37 = vld [vmem:[%s7121_s1 + $0x368] ss:$48 sps:$4 sm:$0xff]   ;;  %v4950_v39 = vld [vmem:[%s7121_s1 + $0x30c] ss:$48 sps:$4 sm:$0xff]  }
  0x38   : > { %v4945_v38 = vld [vmem:[%s7121_s1 + $0x608] ss:$48 sps:$4 sm:$0xff]   ;;  %p5472_p3 = pnand %p5471_p2, %p5465_p13 }
  0x39   : > { %2090 = vmatmul.mubr.bf16.vlgmr.msra.gmra.mxu1 %v5730_v41  ;;  %2035 = vmatpush2.bf16.msra.mxu0 %v4860_v42  ;;  %v4948_v42 = vld [vmem:[%s7121_s1 + $0x308] ss:$48 sps:$4 sm:$0xff]  }
  0x3a   : > { %2099 = vmatpush1.bf16.msra.mxu1 %v4857_v40  ;;  %2036 = vmatprep.subr.bf16.mxu0 %v4862_v43  ;;  %v4953_v40 = vld [vmem:[%s7121_s1 + $0x90c] ss:$48 sps:$4 sm:$0xff]   ;;  %v4951_v43 = vld [vmem:[%s7121_s1 + $0x908] ss:$48 sps:$4 sm:$0xff]  }
  0x3b   : > { %2100 = vmatprep.subr.bf16.mxu1 %v4866_v44  ;;  %2130 = vmatprep.mubr.bf16.mxu1 %v5761_v52  ;;  %v4956_v44 = vld [vmem:[%s7121_s1 + $0x2b4] ss:$48 sps:$4 sm:$0xff]  }
  0x3d   : > { %2037 = vmatpush2.bf16.msra.mxu0 %v4867_v46  ;;  %v4954_v46 = vld [vmem:[%s7121_s1 + $0x2b0] ss:$48 sps:$4 sm:$0xff]  }
  0x3e   : > { %2101 = vmatpush1.bf16.msra.mxu1 %v4864_v45  ;;  %2038 = vmatprep.subr.bf16.mxu0 %v4868_v47  ;;  %v4974_v45 = vld [vmem:[%s7121_s1 + $0x8b4] ss:$48 sps:$4 sm:$0xff]   ;;  %v4972_v47 = vld [vmem:[%s7121_s1 + $0x8b0] ss:$48 sps:$4 sm:$0xff]  }
  0x3f   : > { %2102 = vmatprep.subr.bf16.mxu1 %v4872_v48  ;;  %v4959_v48 = vld [vmem:[%s7121_s1 + $0x254] ss:$48 sps:$4 sm:$0xff]  }
  0x41   : > { %2039 = vmatpush2.bf16.msra.mxu0 %v4873_v51  ;;  %v4978_v51 = vld [vmem:[%s7121_s1 + $0x850] ss:$48 sps:$4 sm:$0xff]  }
  0x42   : > { %2103 = vmatpush1.bf16.msra.mxu1 %v4870_v50  ;;  %2040 = vmatprep.subr.bf16.mxu0 %v4874_v53  ;;  %v4957_v50 = vld [vmem:[%s7121_s1 + $0x250] ss:$48 sps:$4 sm:$0xff]   ;;  %v4962_v53 = vld [vmem:[%s7121_s1 + $0x1f4] ss:$48 sps:$4 sm:$0xff]  }
  0x43   : > { %2104 = vmatprep.subr.bf16.mxu1 %v4878_v54  ;;  %v4986_v54 = vld [vmem:[%s7121_s1 + $0x7f4] ss:$48 sps:$4 sm:$0xff]  }
  0x45   : > { %2041 = vmatpush2.bf16.msra.mxu0 %v4879_v56  ;;  %v4984_v56 = vld [vmem:[%s7121_s1 + $0x7f0] ss:$48 sps:$4 sm:$0xff]  }
  0x46   : > { %2105 = vmatpush1.bf16.msra.mxu1 %v4876_v55  ;;  %2042 = vmatprep.subr.bf16.mxu0 %v4880_v57  ;;  %v4960_v55 = vld [vmem:[%s7121_s1 + $0x1f0] ss:$48 sps:$4 sm:$0xff]   ;;  %v4965_v57 = vld [vmem:[%s7121_s1 + $0x194] ss:$48 sps:$4 sm:$0xff]  }
  0x47   : > { %2106 = vmatprep.subr.bf16.mxu1 %v4884_v58  ;;  %v4992_v58 = vld [vmem:[%s7121_s1 + $0x794] ss:$48 sps:$4 sm:$0xff]  }
  0x49   : > { %2043 = vmatpush2.bf16.msra.mxu0 %v4885_v60  ;;  %v4990_v60 = vld [vmem:[%s7121_s1 + $0x790] ss:$48 sps:$4 sm:$0xff]  }
  0x4a   : > { %2107 = vmatpush1.bf16.msra.mxu1 %v4882_v59  ;;  %2044 = vmatprep.subr.bf16.mxu0 %v4886_v61  ;;  %v4963_v59 = vld [vmem:[%s7121_s1 + $0x190] ss:$48 sps:$4 sm:$0xff]   ;;  %v4968_v61 = vld [vmem:[%s7121_s1 + $0x134] ss:$48 sps:$4 sm:$0xff]  }
  0x4b   : > { %2108 = vmatprep.subr.bf16.mxu1 %v4890_v62  ;;  %v4998_v62 = vld [vmem:[%s7121_s1 + $0x734] ss:$48 sps:$4 sm:$0xff]  }
  0x4d   : > { %2045 = vmatpush2.bf16.msra.mxu0 %v4891_v0  ;;  %v4996_v0 = vld [vmem:[%s7121_s1 + $0x730] ss:$48 sps:$4 sm:$0xff]  }
  0x4e   : > { %2109 = vmatpush1.bf16.msra.mxu1 %v4888_v63  ;;  %2046 = vmatprep.subr.bf16.mxu0 %v4892_v1  ;;  %v4966_v63 = vld [vmem:[%s7121_s1 + $0x130] ss:$48 sps:$4 sm:$0xff]   ;;  %v4971_v1 = vld [vmem:[%s7121_s1 + $0xd4] ss:$48 sps:$4 sm:$0xff]  }
  0x4f   : > { %2110 = vmatprep.subr.bf16.mxu1 %v4896_v2  ;;  %v5004_v2 = vld [vmem:[%s7121_s1 + $0x6d4] ss:$48 sps:$4 sm:$0xff]  }
  0x51   : > { %2047 = vmatpush2.bf16.msra.mxu0 %v4897_v4  ;;  %v5002_v4 = vld [vmem:[%s7121_s1 + $0x6d0] ss:$48 sps:$4 sm:$0xff]  }
  0x52   : > { %2111 = vmatpush1.bf16.msra.mxu1 %v4894_v3  ;;  %2139 = vmatprep.subr.bf16.mxu0 %v4905_v6  ;;  %v4969_v3 = vld [vmem:[%s7121_s1 + $0xd0] ss:$48 sps:$4 sm:$0xff]   ;;  %v5010_v6 = vld [vmem:[%s7121_s1 + $0x674] ss:$48 sps:$4 sm:$0xff]  }
  0x53   : > { %2112 = vmatprep.subr.bf16.mxu1 %v4902_v5  ;;  %v4977_v5 = vld [vmem:[%s7121_s1 + $0x74] ss:$48 sps:$4 sm:$0xff]  }
  0x54   : > { %2049 = vmatmul.mubr.bf16.vlgmr.msra.gmra.mxu0 %v5819_v7 }
  0x55   : > { %2140 = vmatpush1.bf16.msra.mxu0 %v4903_v9  ;;  %4454 = vmatprep.mubr.msk.bf16.mxu0 %vm2012_vm0, %v5699_v31  ;;  %v5008_v9 = vld [vmem:[%s7121_s1 + $0x670] ss:$48 sps:$4 sm:$0xff]  }
  0x56   : > { %2113 = vmatpush1.bf16.msra.mxu1 %v4900_v8  ;;  %2141 = vmatprep.subr.bf16.mxu0 %v4911_v11  ;;  %v4975_v8 = vld [vmem:[%s7121_s1 + $0x70] ss:$48 sps:$4 sm:$0xff]   ;;  %v5016_v11 = vld [vmem:[%s7121_s1 + $0x614] ss:$48 sps:$4 sm:$0xff]  }
  0x57   : > { %2114 = vmatprep.subr.bf16.mxu1 %v4908_v10  ;;  %v4983_v10 = vld [vmem:[%s7121_s1 + $0x14] ss:$48 sps:$4 sm:$0xff]  }
  0x59   : > { %2142 = vmatpush1.bf16.msra.mxu0 %v4909_v13  ;;  %v5014_v13 = vld [vmem:[%s7121_s1 + $0x610] ss:$48 sps:$4 sm:$0xff]  }
  0x5a   : > { %2115 = vmatpush2.bf16.msra.mxu1 %v4906_v12  ;;  %2143 = vmatprep.subr.bf16.mxu0 %v4917_v15  ;;  %v4981_v12 = vld [vmem:[%s7121_s1 + $0x10] ss:$48 sps:$4 sm:$0xff]   ;;  %v5022_v15 = vld [vmem:[%s7121_s1 + $0x914] ss:$48 sps:$4 sm:$0xff]  }
  0x5b   : > { %2116 = vmatprep.subr.bf16.mxu1 %v4914_v14  ;;  %v4989_v14 = vld [vmem:[%s7121_s1 + $0x5b4] ss:$48 sps:$4 sm:$0xff]  }
  0x5d   : > { %2144 = vmatpush1.bf16.msra.mxu0 %v4915_v17  ;;  %v5020_v17 = vld [vmem:[%s7121_s1 + $0x910] ss:$48 sps:$4 sm:$0xff]  }
  0x5e   : > { %2117 = vmatpush2.bf16.msra.mxu1 %v4912_v16  ;;  %2145 = vmatprep.subr.bf16.mxu0 %v4923_v19  ;;  %v4987_v16 = vld [vmem:[%s7121_s1 + $0x5b0] ss:$48 sps:$4 sm:$0xff]   ;;  %v5031_v19 = vld [vmem:[%s7121_s1 + $0x2bc] ss:$48 sps:$4 sm:$0xff]  }
  0x5f   : > { %2118 = vmatprep.subr.bf16.mxu1 %v4920_v18  ;;  %v4995_v18 = vld [vmem:[%s7121_s1 + $0x554] ss:$48 sps:$4 sm:$0xff]  }
  0x61   : > { %2146 = vmatpush1.bf16.msra.mxu0 %v4921_v21  ;;  %v5029_v21 = vld [vmem:[%s7121_s1 + $0x2b8] ss:$48 sps:$4 sm:$0xff]  }
  0x62   : > { %2119 = vmatpush2.bf16.msra.mxu1 %v4918_v20  ;;  %2147 = vmatprep.subr.bf16.mxu0 %v4929_v23  ;;  %v4993_v20 = vld [vmem:[%s7121_s1 + $0x550] ss:$48 sps:$4 sm:$0xff]   ;;  %v5034_v23 = vld [vmem:[%s7121_s1 + $0x25c] ss:$48 sps:$4 sm:$0xff]  }
  0x63   : > { %2120 = vmatprep.subr.bf16.mxu1 %v4926_v22  ;;  %v5001_v22 = vld [vmem:[%s7121_s1 + $0x4f4] ss:$48 sps:$4 sm:$0xff]  }
  0x65   : > { %2148 = vmatpush1.bf16.msra.mxu0 %v4927_v25  ;;  %v5032_v25 = vld [vmem:[%s7121_s1 + $0x258] ss:$48 sps:$4 sm:$0xff]  }
  0x66   : > { %2121 = vmatpush2.bf16.msra.mxu1 %v4924_v24  ;;  %2149 = vmatprep.subr.bf16.mxu0 %v4935_v27  ;;  %v4999_v24 = vld [vmem:[%s7121_s1 + $0x4f0] ss:$48 sps:$4 sm:$0xff]   ;;  %v5037_v27 = vld [vmem:[%s7121_s1 + $0x1fc] ss:$48 sps:$4 sm:$0xff]  }
  0x67   : > { %2122 = vmatprep.subr.bf16.mxu1 %v4932_v26  ;;  %v5007_v26 = vld [vmem:[%s7121_s1 + $0x494] ss:$48 sps:$4 sm:$0xff]  }
  0x69   : > { %2150 = vmatpush1.bf16.msra.mxu0 %v4933_v29  ;;  %v5035_v29 = vld [vmem:[%s7121_s1 + $0x1f8] ss:$48 sps:$4 sm:$0xff]  }
  0x6a   : > { %2123 = vmatpush2.bf16.msra.mxu1 %v4930_v28  ;;  %2151 = vmatprep.subr.bf16.mxu0 %v4941_v32  ;;  %v5005_v28 = vld [vmem:[%s7121_s1 + $0x490] ss:$48 sps:$4 sm:$0xff]   ;;  %v5040_v32 = vld [vmem:[%s7121_s1 + $0x19c] ss:$48 sps:$4 sm:$0xff]  }
  0x6b   : > { %2124 = vmatprep.subr.bf16.mxu1 %v4938_v30  ;;  %v5013_v30 = vld [vmem:[%s7121_s1 + $0x434] ss:$48 sps:$4 sm:$0xff]  }
  0x6d   : > { %2152 = vmatpush1.bf16.msra.mxu0 %v4939_v34  ;;  %v5038_v34 = vld [vmem:[%s7121_s1 + $0x198] ss:$48 sps:$4 sm:$0xff]  }
  0x6e   : > { %2125 = vmatpush2.bf16.msra.mxu1 %v4936_v33  ;;  %2153 = vmatprep.subr.bf16.mxu0 %v4947_v36  ;;  %v5011_v33 = vld [vmem:[%s7121_s1 + $0x430] ss:$48 sps:$4 sm:$0xff]   ;;  %v5043_v36 = vld [vmem:[%s7121_s1 + $0x13c] ss:$48 sps:$4 sm:$0xff]  }
  0x6f   : > { %2126 = vmatprep.subr.bf16.mxu1 %v4944_v35  ;;  %v5019_v35 = vld [vmem:[%s7121_s1 + $0x3d4] ss:$48 sps:$4 sm:$0xff]  }
  0x71   : > { %2154 = vmatpush1.bf16.msra.mxu0 %v4945_v38  ;;  %v5041_v38 = vld [vmem:[%s7121_s1 + $0x138] ss:$48 sps:$4 sm:$0xff]  }
  0x72   : > { %2127 = vmatpush2.bf16.msra.mxu1 %v4942_v37  ;;  %2169 = vmatprep.subr.bf16.mxu0 %v4953_v40  ;;  %v5017_v37 = vld [vmem:[%s7121_s1 + $0x3d0] ss:$48 sps:$4 sm:$0xff]   ;;  %v5046_v40 = vld [vmem:[%s7121_s1 + $0xdc] ss:$48 sps:$4 sm:$0xff]  }
  0x73   : > { %2128 = vmatprep.subr.bf16.mxu1 %v4950_v39  ;;  %v5025_v39 = vld [vmem:[%s7121_s1 + $0x374] ss:$48 sps:$4 sm:$0xff]  }
  0x75   : > { %2170 = vmatpush2.bf16.msra.mxu0 %v4951_v43  ;;  %v5044_v43 = vld [vmem:[%s7121_s1 + $0xd8] ss:$48 sps:$4 sm:$0xff]  }
  0x76   : > { %2129 = vmatpush2.bf16.msra.mxu1 %v4948_v42  ;;  %2180 = vmatprep.subr.bf16.mxu0 %v4956_v44  ;;  %v5023_v42 = vld [vmem:[%s7121_s1 + $0x370] ss:$48 sps:$4 sm:$0xff]   ;;  %v5028_v44 = vld [vmem:[%s7121_s1 + $0x314] ss:$48 sps:$4 sm:$0xff]  }
  0x77   : > { %2221 = vmatprep.subr.bf16.mxu1 %v4974_v45  ;;  %v5049_v45 = vld [vmem:[%s7121_s1 + $0x7c] ss:$48 sps:$4 sm:$0xff]  }
  0x78   : > { %2172 = vmatmul.mubr.bf16.vlgmr.msra.gmra.mxu0 %v5730_v41 }
  0x79   : > { %2131 = vmatmul.mubr.bf16.vlgmr.msra.gmra.mxu1 %v5819_v7  ;;  %2181 = vmatpush1.bf16.msra.mxu0 %v4954_v46  ;;  %v5026_v46 = vld [vmem:[%s7121_s1 + $0x310] ss:$48 sps:$4 sm:$0xff]  }
  0x7a   : > { %2222 = vmatpush1.bf16.msra.mxu1 %v4972_v47  ;;  %2182 = vmatprep.subr.bf16.mxu0 %v4959_v48  ;;  %v5047_v47 = vld [vmem:[%s7121_s1 + $0x78] ss:$48 sps:$4 sm:$0xff]   ;;  %v5052_v48 = vld [vmem:[%s7121_s1 + $0x8bc] ss:$48 sps:$4 sm:$0xff]  }
  0x7b   : > { %2223 = vmatprep.subr.bf16.mxu1 %v4980_v49  ;;  %4455 = vmatprep.mubr.msk.bf16.mxu1 %vm2012_vm0, %v5699_v31  ;;  %v5055_v49 = vld [vmem:[%s7121_s1 + $0x1c] ss:$48 sps:$4 sm:$0xff]  }
  0x7c   : > { %2212 = vmatprep.mubr.bf16.mxu0 %v5761_v52 }
  0x7d   : > { %2183 = vmatpush1.bf16.msra.mxu0 %v4957_v50  ;;  %v5050_v50 = vld [vmem:[%s7121_s1 + $0x8b8] ss:$48 sps:$4 sm:$0xff]  }
  0x7e   : > { %2224 = vmatpush1.bf16.msra.mxu1 %v4978_v51  ;;  %2184 = vmatprep.subr.bf16.mxu0 %v4962_v53  ;;  %v5053_v51 = vld [vmem:[%s7121_s1 + $0x18] ss:$48 sps:$4 sm:$0xff]   ;;  %v5058_v53 = vld [vmem:[%s7121_s1 + $0x85c] ss:$48 sps:$4 sm:$0xff]  }
  0x7f   : > { %2225 = vmatprep.subr.bf16.mxu1 %v4986_v54  ;;  %v5061_v54 = vld [vmem:[%s7121_s1 + $0x5bc] ss:$48 sps:$4 sm:$0xff]  }
  0x81   : > { %2185 = vmatpush1.bf16.msra.mxu0 %v4960_v55  ;;  %v5056_v55 = vld [vmem:[%s7121_s1 + $0x858] ss:$48 sps:$4 sm:$0xff]  }
  0x82   : > { %2226 = vmatpush1.bf16.msra.mxu1 %v4984_v56  ;;  %2186 = vmatprep.subr.bf16.mxu0 %v4965_v57  ;;  %v5059_v56 = vld [vmem:[%s7121_s1 + $0x5b8] ss:$48 sps:$4 sm:$0xff]   ;;  %v5064_v57 = vld [vmem:[%s7121_s1 + $0x7fc] ss:$48 sps:$4 sm:$0xff]  }
  0x83   : > { %2227 = vmatprep.subr.bf16.mxu1 %v4992_v58  ;;  %v5067_v58 = vld [vmem:[%s7121_s1 + $0x55c] ss:$48 sps:$4 sm:$0xff]  }
  0x85   : > { %2187 = vmatpush1.bf16.msra.mxu0 %v4963_v59  ;;  %v5062_v59 = vld [vmem:[%s7121_s1 + $0x7f8] ss:$48 sps:$4 sm:$0xff]  }
  0x86   : > { %2228 = vmatpush1.bf16.msra.mxu1 %v4990_v60  ;;  %2188 = vmatprep.subr.bf16.mxu0 %v4968_v61  ;;  %v5065_v60 = vld [vmem:[%s7121_s1 + $0x558] ss:$48 sps:$4 sm:$0xff]   ;;  %v5070_v61 = vld [vmem:[%s7121_s1 + $0x79c] ss:$48 sps:$4 sm:$0xff]  }
  0x87   : > { %2229 = vmatprep.subr.bf16.mxu1 %v4998_v62  ;;  %v5073_v62 = vld [vmem:[%s7121_s1 + $0x4fc] ss:$48 sps:$4 sm:$0xff]  }
  0x89   : > { %2189 = vmatpush1.bf16.msra.mxu0 %v4966_v63  ;;  %v5068_v63 = vld [vmem:[%s7121_s1 + $0x798] ss:$48 sps:$4 sm:$0xff]  }
  0x8a   : > { %2230 = vmatpush1.bf16.msra.mxu1 %v4996_v0  ;;  %2190 = vmatprep.subr.bf16.mxu0 %v4971_v1  ;;  %v5071_v0 = vld [vmem:[%s7121_s1 + $0x4f8] ss:$48 sps:$4 sm:$0xff]   ;;  %v5076_v1 = vld [vmem:[%s7121_s1 + $0x73c] ss:$48 sps:$4 sm:$0xff]  }
  0x8b   : > { %2231 = vmatprep.subr.bf16.mxu1 %v5004_v2  ;;  %v5079_v2 = vld [vmem:[%s7121_s1 + $0x49c] ss:$48 sps:$4 sm:$0xff]  }
  0x8d   : > { %2191 = vmatpush1.bf16.msra.mxu0 %v4969_v3  ;;  %v5074_v3 = vld [vmem:[%s7121_s1 + $0x738] ss:$48 sps:$4 sm:$0xff]  }
  0x8e   : > { %2232 = vmatpush1.bf16.msra.mxu1 %v5002_v4  ;;  %2192 = vmatprep.subr.bf16.mxu0 %v4977_v5  ;;  %v5077_v4 = vld [vmem:[%s7121_s1 + $0x498] ss:$48 sps:$4 sm:$0xff]   ;;  %v5082_v5 = vld [vmem:[%s7121_s1 + $0x6dc] ss:$48 sps:$4 sm:$0xff]  }
  0x8f   : > { %2233 = vmatprep.subr.bf16.mxu1 %v5010_v6  ;;  %v5085_v6 = vld [vmem:[%s7121_s1 + $0x43c] ss:$48 sps:$4 sm:$0xff]  }
  0x91   : > { %2193 = vmatpush1.bf16.msra.mxu0 %v4975_v8  ;;  %v5080_v8 = vld [vmem:[%s7121_s1 + $0x6d8] ss:$48 sps:$4 sm:$0xff]  }
  0x92   : > { %2234 = vmatpush1.bf16.msra.mxu1 %v5008_v9  ;;  %2194 = vmatprep.subr.bf16.mxu0 %v4983_v10  ;;  %v5083_v9 = vld [vmem:[%s7121_s1 + $0x438] ss:$48 sps:$4 sm:$0xff]   ;;  %v5088_v10 = vld [vmem:[%s7121_s1 + $0x67c] ss:$48 sps:$4 sm:$0xff]  }
  0x93   : > { %2235 = vmatprep.subr.bf16.mxu1 %v5016_v11  ;;  %v5091_v11 = vld [vmem:[%s7121_s1 + $0x3dc] ss:$48 sps:$4 sm:$0xff]  }
  0x95   : > { %2195 = vmatpush1.bf16.msra.mxu0 %v4981_v12  ;;  %v5086_v12 = vld [vmem:[%s7121_s1 + $0x678] ss:$48 sps:$4 sm:$0xff]  }
  0x96   : > { %2236 = vmatpush1.bf16.msra.mxu1 %v5014_v13  ;;  %2196 = vmatprep.subr.bf16.mxu0 %v4989_v14  ;;  %v5089_v13 = vld [vmem:[%s7121_s1 + $0x3d8] ss:$48 sps:$4 sm:$0xff]   ;;  %v5094_v14 = vld [vmem:[%s7121_s1 + $0x61c] ss:$48 sps:$4 sm:$0xff]  }
  0x97   : > { %2251 = vmatprep.subr.bf16.mxu1 %v5022_v15  ;;  %v5097_v15 = vld [vmem:[%s7121_s1 + $0x37c] ss:$48 sps:$4 sm:$0xff]  }
  0x99   : > { %2197 = vmatpush2.bf16.msra.mxu0 %v4987_v16  ;;  %v5092_v16 = vld [vmem:[%s7121_s1 + $0x618] ss:$48 sps:$4 sm:$0xff]  }
  0x9a   : > { %2252 = vmatpush2.bf16.msra.mxu1 %v5020_v17  ;;  %2198 = vmatprep.subr.bf16.mxu0 %v4995_v18  ;;  %v5095_v17 = vld [vmem:[%s7121_s1 + $0x378] ss:$48 sps:$4 sm:$0xff]   ;;  %v5100_v18 = vld [vmem:[%s7121_s1 + $0x91c] ss:$48 sps:$4 sm:$0xff]  }
  0x9b   : > { %2262 = vmatprep.subr.bf16.mxu1 %v5031_v19  ;;  %v5103_v19 = vld [vmem:[%s7121_s1 + $0x31c] ss:$48 sps:$4 sm:$0xff]  }
  0x9d   : > { %2254 = vmatmul.mubr.bf16.vlgmr.msra.gmra.mxu1 %v5730_v41  ;;  %2199 = vmatpush2.bf16.msra.mxu0 %v4993_v20  ;;  %v5098_v20 = vld [vmem:[%s7121_s1 + $0x918] ss:$48 sps:$4 sm:$0xff]  }
  0x9e   : > { %2263 = vmatpush1.bf16.msra.mxu1 %v5029_v21  ;;  %2200 = vmatprep.subr.bf16.mxu0 %v5001_v22  ;;  %v5101_v21 = vld [vmem:[%s7121_s1 + $0x318] ss:$48 sps:$4 sm:$0xff]   ;;  %v5106_v22 = vld [vmem:[%s7121_s1 + $0x2c4] ss:$48 sps:$4 sm:$0xff]  }
  0x9f   : > { %2264 = vmatprep.subr.bf16.mxu1 %v5034_v23  ;;  %2294 = vmatprep.mubr.bf16.mxu1 %v5761_v52  ;;  %v5112_v23 = vld [vmem:[%s7121_s1 + $0x8c4] ss:$48 sps:$4 sm:$0xff]  }
  0xa1   : > { %2201 = vmatpush2.bf16.msra.mxu0 %v4999_v24  ;;  %v5104_v24 = vld [vmem:[%s7121_s1 + $0x2c0] ss:$48 sps:$4 sm:$0xff]  }
  0xa2   : > { %2265 = vmatpush1.bf16.msra.mxu1 %v5032_v25  ;;  %2202 = vmatprep.subr.bf16.mxu0 %v5007_v26  ;;  %v5110_v25 = vld [vmem:[%s7121_s1 + $0x8c0] ss:$48 sps:$4 sm:$0xff]   ;;  %v5109_v26 = vld [vmem:[%s7121_s1 + $0x264] ss:$48 sps:$4 sm:$0xff]  }
  0xa3   : > { %2266 = vmatprep.subr.bf16.mxu1 %v5037_v27  ;;  %v5118_v27 = vld [vmem:[%s7121_s1 + $0x864] ss:$48 sps:$4 sm:$0xff]  }
  0xa5   : > { %2203 = vmatpush2.bf16.msra.mxu0 %v5005_v28  ;;  %v5107_v28 = vld [vmem:[%s7121_s1 + $0x260] ss:$48 sps:$4 sm:$0xff]  }
  0xa6   : > { %2267 = vmatpush1.bf16.msra.mxu1 %v5035_v29  ;;  %2204 = vmatprep.subr.bf16.mxu0 %v5013_v30  ;;  %v5115_v29 = vld [vmem:[%s7121_s1 + $0x204] ss:$48 sps:$4 sm:$0xff]   ;;  %v5116_v30 = vld [vmem:[%s7121_s1 + $0x860] ss:$48 sps:$4 sm:$0xff]  }
  0xa7   : > { %2268 = vmatprep.subr.bf16.mxu1 %v5040_v32  ;;  %v5124_v32 = vld [vmem:[%s7121_s1 + $0x804] ss:$48 sps:$4 sm:$0xff]  }
  0xa9   : > { %2205 = vmatpush2.bf16.msra.mxu0 %v5011_v33  ;;  %v5113_v33 = vld [vmem:[%s7121_s1 + $0x200] ss:$48 sps:$4 sm:$0xff]  }
  0xaa   : > { %2269 = vmatpush1.bf16.msra.mxu1 %v5038_v34  ;;  %2206 = vmatprep.subr.bf16.mxu0 %v5019_v35  ;;  %v5121_v34 = vld [vmem:[%s7121_s1 + $0x1a4] ss:$48 sps:$4 sm:$0xff]   ;;  %v5122_v35 = vld [vmem:[%s7121_s1 + $0x800] ss:$48 sps:$4 sm:$0xff]  }
  0xab   : > { %2270 = vmatprep.subr.bf16.mxu1 %v5043_v36  ;;  %v5130_v36 = vld [vmem:[%s7121_s1 + $0x7a4] ss:$48 sps:$4 sm:$0xff]  }
  0xad   : > { %2207 = vmatpush2.bf16.msra.mxu0 %v5017_v37  ;;  %v5119_v37 = vld [vmem:[%s7121_s1 + $0x1a0] ss:$48 sps:$4 sm:$0xff]  }
  0xae   : > { %2271 = vmatpush1.bf16.msra.mxu1 %v5041_v38  ;;  %2208 = vmatprep.subr.bf16.mxu0 %v5025_v39  ;;  %v5128_v38 = vld [vmem:[%s7121_s1 + $0x7a0] ss:$48 sps:$4 sm:$0xff]   ;;  %v5127_v39 = vld [vmem:[%s7121_s1 + $0x144] ss:$48 sps:$4 sm:$0xff]  }
  0xaf   : > { %2272 = vmatprep.subr.bf16.mxu1 %v5046_v40  ;;  %v5136_v40 = vld [vmem:[%s7121_s1 + $0x744] ss:$48 sps:$4 sm:$0xff]  }
  0xb1   : > { %2209 = vmatpush2.bf16.msra.mxu0 %v5023_v42  ;;  %v5125_v42 = vld [vmem:[%s7121_s1 + $0x140] ss:$48 sps:$4 sm:$0xff]  }
  0xb2   : > { %2273 = vmatpush1.bf16.msra.mxu1 %v5044_v43  ;;  %2210 = vmatprep.subr.bf16.mxu0 %v5028_v44  ;;  %v5134_v43 = vld [vmem:[%s7121_s1 + $0x740] ss:$48 sps:$4 sm:$0xff]   ;;  %v5133_v44 = vld [vmem:[%s7121_s1 + $0xe4] ss:$48 sps:$4 sm:$0xff]  }
  0xb3   : > { %2274 = vmatprep.subr.bf16.mxu1 %v5049_v45  ;;  %v5142_v45 = vld [vmem:[%s7121_s1 + $0x6e4] ss:$48 sps:$4 sm:$0xff]  }
  0xb5   : > { %2211 = vmatpush2.bf16.msra.mxu0 %v5026_v46  ;;  %v5131_v46 = vld [vmem:[%s7121_s1 + $0xe0] ss:$48 sps:$4 sm:$0xff]  }
  0xb6   : > { %2275 = vmatpush1.bf16.msra.mxu1 %v5047_v47  ;;  %2303 = vmatprep.subr.bf16.mxu0 %v5052_v48  ;;  %v5140_v47 = vld [vmem:[%s7121_s1 + $0x6e0] ss:$48 sps:$4 sm:$0xff]   ;;  %v5139_v48 = vld [vmem:[%s7121_s1 + $0x84] ss:$48 sps:$4 sm:$0xff]  }
  0xb7   : > { %2276 = vmatprep.subr.bf16.mxu1 %v5055_v49  ;;  %v5148_v49 = vld [vmem:[%s7121_s1 + $0x684] ss:$48 sps:$4 sm:$0xff]  }
  0xb8   : > { %2213 = vmatmul.mubr.bf16.vlgmr.msra.gmra.mxu0 %v5819_v7 }
  0xb9   : > { %2304 = vmatpush1.bf16.msra.mxu0 %v5050_v50  ;;  %4456 = vmatprep.mubr.msk.bf16.mxu0 %vm2012_vm0, %v5699_v31  ;;  %v5137_v50 = vld [vmem:[%s7121_s1 + $0x80] ss:$48 sps:$4 sm:$0xff]  }
  0xba   : > { %2277 = vmatpush1.bf16.msra.mxu1 %v5053_v51  ;;  %2305 = vmatprep.subr.bf16.mxu0 %v5058_v53  ;;  %v5146_v51 = vld [vmem:[%s7121_s1 + $0x680] ss:$48 sps:$4 sm:$0xff]   ;;  %v5145_v53 = vld [vmem:[%s7121_s1 + $0x24] ss:$48 sps:$4 sm:$0xff]  }
  0xbb   : > { %2278 = vmatprep.subr.bf16.mxu1 %v5061_v54  ;;  %v5154_v54 = vld [vmem:[%s7121_s1 + $0x624] ss:$48 sps:$4 sm:$0xff]  }
  0xbd   : > { %2306 = vmatpush1.bf16.msra.mxu0 %v5056_v55  ;;  %v5143_v55 = vld [vmem:[%s7121_s1 + $0x20] ss:$48 sps:$4 sm:$0xff]  }
  0xbe   : > { %2279 = vmatpush2.bf16.msra.mxu1 %v5059_v56  ;;  %2307 = vmatprep.subr.bf16.mxu0 %v5064_v57  ;;  %v5152_v56 = vld [vmem:[%s7121_s1 + $0x620] ss:$48 sps:$4 sm:$0xff]   ;;  %v5151_v57 = vld [vmem:[%s7121_s1 + $0x5c4] ss:$48 sps:$4 sm:$0xff]  }
  0xbf   : > { %2280 = vmatprep.subr.bf16.mxu1 %v5067_v58  ;;  %v5160_v58 = vld [vmem:[%s7121_s1 + $0x924] ss:$48 sps:$4 sm:$0xff]  }
  0xc1   : > { %2308 = vmatpush1.bf16.msra.mxu0 %v5062_v59  ;;  %v5149_v59 = vld [vmem:[%s7121_s1 + $0x5c0] ss:$48 sps:$4 sm:$0xff]  }
  0xc2   : > { %2281 = vmatpush2.bf16.msra.mxu1 %v5065_v60  ;;  %2309 = vmatprep.subr.bf16.mxu0 %v5070_v61  ;;  %v5158_v60 = vld [vmem:[%s7121_s1 + $0x920] ss:$48 sps:$4 sm:$0xff]  }
  0xc3   : > { %2282 = vmatprep.subr.bf16.mxu1 %v5073_v62  ;;  %v5157_v62 = vld [vmem:[%s7121_s1 + $0x564] ss:$48 sps:$4 sm:$0xff]  }
  0xc5   : > { %2310 = vmatpush1.bf16.msra.mxu0 %v5068_v63  ;;  %v5166_v63 = vld [vmem:[%s7121_s1 + $0x2cc] ss:$48 sps:$4 sm:$0xff]  }
  0xc6   : > { %2283 = vmatpush2.bf16.msra.mxu1 %v5071_v0  ;;  %2311 = vmatprep.subr.bf16.mxu0 %v5076_v1  ;;  %v5155_v1 = vld [vmem:[%s7121_s1 + $0x560] ss:$48 sps:$4 sm:$0xff]  }
  0xc7   : > { %2284 = vmatprep.subr.bf16.mxu1 %v5079_v2  ;;  %v5164_v2 = vld [vmem:[%s7121_s1 + $0x2c8] ss:$48 sps:$4 sm:$0xff]  }
  0xc9   : > { %2312 = vmatpush1.bf16.msra.mxu0 %v5074_v3 }
  0xca   : > { %2285 = vmatpush2.bf16.msra.mxu1 %v5077_v4  ;;  %2313 = vmatprep.subr.bf16.mxu0 %v5082_v5  ;;  %v5163_v4 = vld [vmem:[%s7121_s1 + $0x504] ss:$48 sps:$4 sm:$0xff]   ;;  %v5172_v5 = vld [vmem:[%s7121_s1 + $0x26c] ss:$48 sps:$4 sm:$0xff]  }
  0xcb   : > { %2286 = vmatprep.subr.bf16.mxu1 %v5085_v6 }
  0xcd   : > { %2314 = vmatpush1.bf16.msra.mxu0 %v5080_v8  ;;  %v5161_v8 = vld [vmem:[%s7121_s1 + $0x500] ss:$48 sps:$4 sm:$0xff]  }
  0xce   : > { %2287 = vmatpush2.bf16.msra.mxu1 %v5083_v9  ;;  %2315 = vmatprep.subr.bf16.mxu0 %v5088_v10  ;;  %v5170_v9 = vld [vmem:[%s7121_s1 + $0x268] ss:$48 sps:$4 sm:$0xff]   ;;  %v5169_v10 = vld [vmem:[%s7121_s1 + $0x4a4] ss:$48 sps:$4 sm:$0xff]  }
  0xcf   : > { %2288 = vmatprep.subr.bf16.mxu1 %v5091_v11  ;;  %v5178_v11 = vld [vmem:[%s7121_s1 + $0x20c] ss:$48 sps:$4 sm:$0xff]  }
  0xd1   : > { %2316 = vmatpush1.bf16.msra.mxu0 %v5086_v12  ;;  %v5167_v12 = vld [vmem:[%s7121_s1 + $0x4a0] ss:$48 sps:$4 sm:$0xff]  }
  0xd2   : > { %2289 = vmatpush2.bf16.msra.mxu1 %v5089_v13  ;;  %2317 = vmatprep.subr.bf16.mxu0 %v5094_v14  ;;  %v5176_v13 = vld [vmem:[%s7121_s1 + $0x208] ss:$48 sps:$4 sm:$0xff]   ;;  %v5175_v14 = vld [vmem:[%s7121_s1 + $0x444] ss:$48 sps:$4 sm:$0xff]  }
  0xd3   : > { %2290 = vmatprep.subr.bf16.mxu1 %v5097_v15  ;;  %v5173_v15 = vld [vmem:[%s7121_s1 + $0x440] ss:$48 sps:$4 sm:$0xff]  }
  0xd5   : > { %2318 = vmatpush1.bf16.msra.mxu0 %v5092_v16  ;;  %v5182_v16 = vld [vmem:[%s7121_s1 + $0x1a8] ss:$48 sps:$4 sm:$0xff]  }
  0xd6   : > { %2291 = vmatpush2.bf16.msra.mxu1 %v5095_v17  ;;  %2333 = vmatprep.subr.bf16.mxu0 %v5100_v18  ;;  %v5181_v17 = vld [vmem:[%s7121_s1 + $0x3e4] ss:$48 sps:$4 sm:$0xff]   ;;  %v5190_v18 = vld [vmem:[%s7121_s1 + $0x14c] ss:$48 sps:$4 sm:$0xff]  }
  0xd7   : > { %2292 = vmatprep.subr.bf16.mxu1 %v5103_v19  ;;  %v5179_v19 = vld [vmem:[%s7121_s1 + $0x3e0] ss:$48 sps:$4 sm:$0xff]  }
  0xd9   : > { %2334 = vmatpush2.bf16.msra.mxu0 %v5098_v20  ;;  %v5188_v20 = vld [vmem:[%s7121_s1 + $0x148] ss:$48 sps:$4 sm:$0xff]  }
  0xda   : > { %2293 = vmatpush2.bf16.msra.mxu1 %v5101_v21  ;;  %2344 = vmatprep.subr.bf16.mxu0 %v5106_v22  ;;  %v5187_v21 = vld [vmem:[%s7121_s1 + $0x384] ss:$48 sps:$4 sm:$0xff]   ;;  %v5196_v22 = vld [vmem:[%s7121_s1 + $0xec] ss:$48 sps:$4 sm:$0xff]  }
  0xdb   : > { %2385 = vmatprep.subr.bf16.mxu1 %v5112_v23  ;;  %v5185_v23 = vld [vmem:[%s7121_s1 + $0x380] ss:$48 sps:$4 sm:$0xff]  }
  0xdc   : > { %2336 = vmatmul.mubr.bf16.vlgmr.msra.gmra.mxu0 %v5730_v41 }
  0xdd   : > { %2295 = vmatmul.mubr.bf16.vlgmr.msra.gmra.mxu1 %v5819_v7  ;;  %2345 = vmatpush1.bf16.msra.mxu0 %v5104_v24  ;;  %v5194_v24 = vld [vmem:[%s7121_s1 + $0xe8] ss:$48 sps:$4 sm:$0xff]  }
  0xde   : > { %2386 = vmatpush1.bf16.msra.mxu1 %v5110_v25  ;;  %2346 = vmatprep.subr.bf16.mxu0 %v5109_v26  ;;  %v5193_v25 = vld [vmem:[%s7121_s1 + $0x324] ss:$48 sps:$4 sm:$0xff]   ;;  %v5199_v26 = vld [vmem:[%s7121_s1 + $0x8c] ss:$48 sps:$4 sm:$0xff]  }
  0xdf   : > { %2387 = vmatprep.subr.bf16.mxu1 %v5118_v27  ;;  %4457 = vmatprep.mubr.msk.bf16.mxu1 %vm2012_vm0, %v5699_v31 }
  0xe0   : > { %2376 = vmatprep.mubr.bf16.mxu0 %v5761_v52 }
  0xe1   : > { %2347 = vmatpush1.bf16.msra.mxu0 %v5107_v28 }
  0xe2   : > { %2388 = vmatpush1.bf16.msra.mxu1 %v5116_v30  ;;  %2348 = vmatprep.subr.bf16.mxu0 %v5115_v29  ;;  %v5191_v29 = vld [vmem:[%s7121_s1 + $0x320] ss:$48 sps:$4 sm:$0xff]   ;;  %v5197_v30 = vld [vmem:[%s7121_s1 + $0x88] ss:$48 sps:$4 sm:$0xff]  }
  0xe3   : > { %2389 = vmatprep.subr.bf16.mxu1 %v5124_v32 }
  0xe5   : > { %2349 = vmatpush1.bf16.msra.mxu0 %v5113_v33  ;;  %v5202_v33 = vld [vmem:[%s7121_s1 + $0x8cc] ss:$48 sps:$4 sm:$0xff]  }
  0xe6   : > { %2390 = vmatpush1.bf16.msra.mxu1 %v5122_v35  ;;  %2350 = vmatprep.subr.bf16.mxu0 %v5121_v34  ;;  %v5205_v34 = vld [vmem:[%s7121_s1 + $0x2c] ss:$48 sps:$4 sm:$0xff]  }
  0xe7   : > { %2391 = vmatprep.subr.bf16.mxu1 %v5130_v36 }
  0xe9   : > { %2351 = vmatpush1.bf16.msra.mxu0 %v5119_v37  ;;  %v5200_v37 = vld [vmem:[%s7121_s1 + $0x8c8] ss:$48 sps:$4 sm:$0xff]  }
  0xea   : > { %2392 = vmatpush1.bf16.msra.mxu1 %v5128_v38  ;;  %2352 = vmatprep.subr.bf16.mxu0 %v5127_v39  ;;  %v5203_v38 = vld [vmem:[%s7121_s1 + $0x28] ss:$48 sps:$4 sm:$0xff]  }
  0xeb   : > { %2393 = vmatprep.subr.bf16.mxu1 %v5136_v40  ;;  %v5208_v40 = vld [vmem:[%s7121_s1 + $0x86c] ss:$48 sps:$4 sm:$0xff]  }
  0xed   : > { %2353 = vmatpush1.bf16.msra.mxu0 %v5125_v42  ;;  %v5211_v42 = vld [vmem:[%s7121_s1 + $0x5cc] ss:$48 sps:$4 sm:$0xff]  }
  0xee   : > { %2394 = vmatpush1.bf16.msra.mxu1 %v5134_v43  ;;  %2354 = vmatprep.subr.bf16.mxu0 %v5133_v44  ;;  %v5206_v43 = vld [vmem:[%s7121_s1 + $0x868] ss:$48 sps:$4 sm:$0xff]  }
  0xef   : > { %2395 = vmatprep.subr.bf16.mxu1 %v5142_v45  ;;  %v5209_v44 = vld [vmem:[%s7121_s1 + $0x5c8] ss:$48 sps:$4 sm:$0xff]   ;;  %v5214_v45 = vld [vmem:[%s7121_s1 + $0x80c] ss:$48 sps:$4 sm:$0xff]  }
  0xf1   : > { %2355 = vmatpush1.bf16.msra.mxu0 %v5131_v46  ;;  %v5217_v46 = vld [vmem:[%s7121_s1 + $0x56c] ss:$48 sps:$4 sm:$0xff]  }
  0xf2   : > { %2396 = vmatpush1.bf16.msra.mxu1 %v5140_v47  ;;  %2356 = vmatprep.subr.bf16.mxu0 %v5139_v48  ;;  %v5212_v47 = vld [vmem:[%s7121_s1 + $0x808] ss:$48 sps:$4 sm:$0xff]  }
  0xf3   : > { %2397 = vmatprep.subr.bf16.mxu1 %v5148_v49  ;;  %v5215_v48 = vld [vmem:[%s7121_s1 + $0x568] ss:$48 sps:$4 sm:$0xff]   ;;  %v5220_v49 = vld [vmem:[%s7121_s1 + $0x7ac] ss:$48 sps:$4 sm:$0xff]  }
  0xf5   : > { %2357 = vmatpush1.bf16.msra.mxu0 %v5137_v50  ;;  %v5218_v50 = vld [vmem:[%s7121_s1 + $0x7a8] ss:$48 sps:$4 sm:$0xff]  }
  0xf6   : > { %2398 = vmatpush1.bf16.msra.mxu1 %v5146_v51  ;;  %2358 = vmatprep.subr.bf16.mxu0 %v5145_v53  ;;  %v5221_v51 = vld [vmem:[%s7121_s1 + $0x508] ss:$48 sps:$4 sm:$0xff]   ;;  %v5226_v53 = vld [vmem:[%s7121_s1 + $0x74c] ss:$48 sps:$4 sm:$0xff]  }
  0xf7   : > { %2399 = vmatprep.subr.bf16.mxu1 %v5154_v54  ;;  %v5229_v54 = vld [vmem:[%s7121_s1 + $0x4ac] ss:$48 sps:$4 sm:$0xff]  }
  0xf9   : > { %v2091_v61 = vpop.f32.mrf.mxu1  ;;  %2359 = vmatpush1.bf16.msra.mxu0 %v5143_v55  ;;  %v5224_v55 = vld [vmem:[%s7121_s1 + $0x748] ss:$48 sps:$4 sm:$0xff]  }
  0xfa   : > { %2400 = vmatpush1.bf16.msra.mxu1 %v5152_v56  ;;  %2360 = vmatprep.subr.bf16.mxu0 %v5151_v57  ;;  %v5227_v56 = vld [vmem:[%s7121_s1 + $0x4a8] ss:$48 sps:$4 sm:$0xff]   ;;  %v5232_v57 = vld [vmem:[%s7121_s1 + $0x6ec] ss:$48 sps:$4 sm:$0xff]  }
  0xfb   : > { %v6355_v0 = vpop.f32.mrf.mxu1  ;;  %2415 = vmatprep.subr.bf16.mxu1 %v5160_v58  ;;  %v5235_v58 = vld [vmem:[%s7121_s1 + $0x44c] ss:$48 sps:$4 sm:$0xff]  }
  0xfd   : > { %v2095_v3 = vpop.f32.mrf.mxu1  ;;  %2361 = vmatpush2.bf16.msra.mxu0 %v5149_v59  ;;  %v5230_v59 = vld [vmem:[%s7121_s1 + $0x6e8] ss:$48 sps:$4 sm:$0xff]  }
  0xfe   : > { %2416 = vmatpush2.bf16.msra.mxu1 %v5158_v60  ;;  %2362 = vmatprep.subr.bf16.mxu0 %v5157_v62  ;;  %v5233_v60 = vld [vmem:[%s7121_s1 + $0x448] ss:$48 sps:$4 sm:$0xff]   ;;  %v5241_v62 = vld [vmem:[%s7121_s1 + $0x3ec] ss:$48 sps:$4 sm:$0xff]  }
  0xff   : > { %v2096_v6 = vpop.f32.mrf.mxu1  ;;  %2426 = vmatprep.subr.bf16.mxu1 %v5166_v63  ;;  %v5236_v63 = vld [vmem:[%s7121_s1 + $0x688] ss:$48 sps:$4 sm:$0xff]  }
 0x100   : > { %v5242_v3 = vld [vmem:[%s7121_s1 + $0x628] ss:$48 sps:$4 sm:$0xff]   ;;  %v5253_v6 = vld [vmem:[%s7121_s1 + $0x32c] ss:$48 sps:$4 sm:$0xff]  }
 0x101   : > { %2418 = vmatmul.mubr.bf16.vlgmr.msra.gmra.mxu1 %v5730_v41  ;;  %2363 = vmatpush2.bf16.msra.mxu0 %v5155_v1  ;;  %v5244_v1 = vld [vmem:[%s7121_s1 + $0x62c] ss:$48 sps:$4 sm:$0xff]  }
 0x102   : > { %2427 = vmatpush1.bf16.msra.mxu1 %v5164_v2  ;;  %2364 = vmatprep.subr.bf16.mxu0 %v5163_v4  ;;  %v5247_v2 = vld [vmem:[%s7121_s1 + $0x38c] ss:$48 sps:$4 sm:$0xff]   ;;  %v5245_v4 = vld [vmem:[%s7121_s1 + $0x388] ss:$48 sps:$4 sm:$0xff]  }
 0x103   : > { %2428 = vmatprep.subr.bf16.mxu1 %v5172_v5  ;;  %2458 = vmatprep.mubr.bf16.mxu1 %v5761_v52  ;;  %v5184_v52 = vld [vmem:[%s7121_s1 + $0x1ac] ss:$48 sps:$4 sm:$0xff]  }
 0x104   : > { %v5250_v5 = vld [vmem:[%s7121_s1 + $0x92c] ss:$48 sps:$4 sm:$0xff]  }
 0x105   : > { %2365 = vmatpush2.bf16.msra.mxu0 %v5161_v8 }
 0x106   : > { %2429 = vmatpush1.bf16.msra.mxu1 %v5170_v9  ;;  %2366 = vmatprep.subr.bf16.mxu0 %v5169_v10 }
 0x107   : > { %2430 = vmatprep.subr.bf16.mxu1 %v5178_v11  ;;  %v5248_v11 = vld [vmem:[%s7121_s1 + $0x928] ss:$48 sps:$4 sm:$0xff]  }
 0x109   : > { %2367 = vmatpush2.bf16.msra.mxu0 %v5167_v12  ;;  %v5251_v12 = vld [vmem:[%s7121_s1 + $0x328] ss:$48 sps:$4 sm:$0xff]  }
 0x10a   : > { %2431 = vmatpush1.bf16.msra.mxu1 %v5176_v13  ;;  %2368 = vmatprep.subr.bf16.mxu0 %v5175_v14 }
 0x10b   : > { %2432 = vmatprep.subr.bf16.mxu1 %v5184_v52 }
 0x10d   : > { %2369 = vmatpush2.bf16.msra.mxu0 %v5173_v15 }
 0x10e   : > { %2433 = vmatpush1.bf16.msra.mxu1 %v5182_v16  ;;  %2370 = vmatprep.subr.bf16.mxu0 %v5181_v17 }
 0x10f   : > { %2434 = vmatprep.subr.bf16.mxu1 %v5190_v18 }
 0x111   : > { %2371 = vmatpush2.bf16.msra.mxu0 %v5179_v19  ;;  %v5524_v19 = vmov 0.0  }
 0x112   : > { %2435 = vmatpush1.bf16.msra.mxu1 %v5188_v20  ;;  %2372 = vmatprep.subr.bf16.mxu0 %v5187_v21 }
 0x113   : > { %2436 = vmatprep.subr.bf16.mxu1 %v5196_v22 }
 0x114   : > { %v2050_v27 = vpop.f32.mrf.mxu0 }
 0x115   : > { %v6431_v28 = vadd.f32 %v2091_v61, %v2050_v27  ;;  %2373 = vmatpush2.bf16.msra.mxu0 %v5185_v23  ;;  %v5238_v61 = vld [vmem:[%s7121_s1 + $0x68c] ss:$48 sps:$4 sm:$0xff]  }
 0x116   : > { %2437 = vmatpush1.bf16.msra.mxu1 %v5194_v24  ;;  %v2052_v32 = vpop.f32.mrf.mxu0  ;;  %2374 = vmatprep.subr.bf16.mxu0 %v5193_v25 }
 0x117   : > { %2438 = vmatprep.subr.bf16.mxu1 %v5199_v26  ;;  %v6446_v35 = vadd.f32 %v6355_v0, %v2052_v32  ;;  %v5239_v0 = vld [vmem:[%s7121_s1 + $0x3e8] ss:$48 sps:$4 sm:$0xff]  }
 0x118   : > { %v2054_v36 = vpop.f32.mrf.mxu0 }
 0x119   : > { %2375 = vmatpush2.bf16.msra.mxu0 %v5191_v29 }
 0x11a   : > { %2439 = vmatpush1.bf16.msra.mxu1 %v5197_v30  ;;  %v2055_v39 = vpop.f32.mrf.mxu0  ;;  %2467 = vmatprep.subr.bf16.mxu0 %v5202_v33  ;;  %v2508_v30 = vpack.c.bf16 %v6431_v28, %v6431_v28  ;;  %v2509_v33 = vpack.c.bf16 %v6446_v35, %v6446_v35 }
 0x11b   : > { %2440 = vmatprep.subr.bf16.mxu1 %v5205_v34 }
 0x11c   : > { %2377 = vmatmul.mubr.bf16.vlgmr.msra.gmra.mxu0 %v5819_v7 }
 0x11d   : > { %2468 = vmatpush1.bf16.msra.mxu0 %v5200_v37  ;;  %4458 = vmatprep.mubr.msk.bf16.mxu0 %vm2012_vm0, %v5699_v31  ;;  %v5223_v31 = vld [vmem:[%s7121_s1 + $0x50c] ss:$48 sps:$4 sm:$0xff]  }
 0x11e   : > { %2441 = vmatpush1.bf16.msra.mxu1 %v5203_v38  ;;  %2469 = vmatprep.subr.bf16.mxu0 %v5208_v40 }
 0x11f   : > { %2442 = vmatprep.subr.bf16.mxu1 %v5211_v42 }
 0x121   : > { %2470 = vmatpush1.bf16.msra.mxu0 %v5206_v43 }
 0x122   : > { %2443 = vmatpush2.bf16.msra.mxu1 %v5209_v44  ;;  %2471 = vmatprep.subr.bf16.mxu0 %v5214_v45 }
 0x123   : > { %2444 = vmatprep.subr.bf16.mxu1 %v5217_v46 }
 0x125   : > { %2472 = vmatpush1.bf16.msra.mxu0 %v5212_v47 }
 0x126   : > { %2445 = vmatpush2.bf16.msra.mxu1 %v5215_v48  ;;  %2473 = vmatprep.subr.bf16.mxu0 %v5220_v49 }
 0x127   : > { %2446 = vmatprep.subr.bf16.mxu1 %v5223_v31 }
 0x129   : > { %2474 = vmatpush1.bf16.msra.mxu0 %v5218_v50 }
 0x12a   : > { %2447 = vmatpush2.bf16.msra.mxu1 %v5221_v51  ;;  %2475 = vmatprep.subr.bf16.mxu0 %v5226_v53 }
 0x12b   : > { %2448 = vmatprep.subr.bf16.mxu1 %v5229_v54 }
 0x12d   : > { %2476 = vmatpush1.bf16.msra.mxu0 %v5224_v55 }
 0x12e   : > { %2449 = vmatpush2.bf16.msra.mxu1 %v5227_v56  ;;  %2477 = vmatprep.subr.bf16.mxu0 %v5232_v57 }
 0x12f   : > { %2450 = vmatprep.subr.bf16.mxu1 %v5235_v58 }
 0x131   : > { %2478 = vmatpush1.bf16.msra.mxu0 %v5230_v59 }
 0x132   : > { %2451 = vmatpush2.bf16.msra.mxu1 %v5233_v60  ;;  %2479 = vmatprep.subr.bf16.mxu0 %v5238_v61 }
 0x133   : > { %2452 = vmatprep.subr.bf16.mxu1 %v5241_v62 }
 0x135   : > { %2480 = vmatpush1.bf16.msra.mxu0 %v5236_v63 }
 0x136   : > { %2453 = vmatpush2.bf16.msra.mxu1 %v5239_v0  ;;  %2481 = vmatprep.subr.bf16.mxu0 %v5244_v1 }
 0x137   : > { %2454 = vmatprep.subr.bf16.mxu1 %v5247_v2 }
 0x138   : > { %v2173_v9 = vpop.f32.mrf.mxu0 }
 0x139   : > { %v2132_v8 = vpop.f32.mrf.mxu1  ;;  %2482 = vmatpush1.bf16.msra.mxu0 %v5242_v3 }
 0x13a   : > { %v6547_v10 = vadd.f32 %v2173_v9, %v2132_v8  ;;  %2455 = vmatpush2.bf16.msra.mxu1 %v5245_v4  ;;  %v2175_v14 = vpop.f32.mrf.mxu0  ;;  %2497 = vmatprep.subr.bf16.mxu0 %v5250_v5  ;;  %v2520_v9 = vlaneseq }
 0x13b   : > { %v2134_v13 = vpop.f32.mrf.mxu1  ;;  %2456 = vmatprep.subr.bf16.mxu1 %v5253_v6 }
 0x13c   : > { %v6555_v52 = vadd.f32 %v2175_v14, %v2134_v13  ;;  %v2177_v15 = vpop.f32.mrf.mxu0 }
 0x13d   : > { %v2136_v16 = vpop.f32.mrf.mxu1  ;;  %2498 = vmatpush2.bf16.msra.mxu0 %v5248_v11  ;;  %v6587_v11 = vshrl.u32 %v2520_v9, 7 }
 0x13e   : > { %2457 = vmatpush2.bf16.msra.mxu1 %v5251_v12  ;;  %v2178_v17 = vpop.f32.mrf.mxu0  ;;  %4710 = vmatprep.subr.bf16.mxu0 %v5524_v19  ;;  %v6589_v12 = vand.u32 127, %v2520_v9  ;;  %v5289_v9 = vld [vmem:[%s7122_s2 + $0x14c] ss:$16 sps:$4 sm:$0xff]  }
 0x13f   : > { %v2137_v18 = vpop.f32.mrf.mxu1  ;;  %4716 = vmatprep.subr.bf16.mxu1 %v5524_v19 }
 0x140   : > { %2500 = vmatmul.mubr.bf16.vlgmr.msra.gmra.mxu0 %v5730_v41  ;;  %vm2524_vm3 = vcmp.le.s32.totalorder %v6589_v12, %v6587_v11  ;;  %v5400_v12 = vld [vmem:[%s7122_s2 + $0x3e4] ss:$16 sps:$4 sm:$0xff]  }
 0x141   : > { %2459 = vmatmul.mubr.bf16.vlgmr.msra.gmra.mxu1 %v5819_v7  ;;  %4712 = vmatprep.mubr.msk.bf16.mxu0 %vm5525_vm1, %v5524_v19 }
 0x142   : > { %4718 = vmatprep.mubr.msk.bf16.mxu1 %vm5525_vm1, %v5524_v19 }
 0x15d   : > { %v2255_v20 = vpop.f32.mrf.mxu1 }
 0x15f   : > { %v2257_v21 = vpop.f32.mrf.mxu1 }
 0x161   : > { %v2259_v22 = vpop.f32.mrf.mxu1 }
 0x163   : > { %v2260_v23 = vpop.f32.mrf.mxu1 }
 0x178   : > { %v2214_v24 = vpop.f32.mrf.mxu0 }
 0x179   : > { %v2256_v25 = vadd.f32 %v2255_v20, %v2214_v24 }
 0x17a   : > { %v2216_v26 = vpop.f32.mrf.mxu0 }
 0x17b   : > { %v2512_v27 = vpack.c.bf16 %v2256_v25, %v2256_v25  ;;  %v2258_v7 = vadd.f32 %v2257_v21, %v2216_v26 }
 0x17c   : > { %v2218_v29 = vpop.f32.mrf.mxu0 }
 0x17d   : > { %4711 = vmatpush3.bf16.xpose.msra.mxu0 %v2512_v27  ;;  %v2513_v32 = vpack.c.bf16 %v2258_v7, %v2258_v7 }
 0x17e   : > { %v2219_v41 = vpop.f32.mrf.mxu0  ;;  %4722 = vmatprep.subr.bf16.mxu0 %v5524_v19 }
 0x184   : > { %4713 = vmatmul.mubr.bf16.vlgmr.msra.gmra.mxu0 %v2508_v30 }
 0x185   : > { %4723 = vmatpush3.bf16.xpose.msra.mxu0 %v2513_v32  ;;  %4724 = vmatprep.mubr.msk.bf16.mxu0 %vm5525_vm1, %v5524_v19 }
 0x18c   : > { %4725 = vmatmul.mubr.bf16.vlgmr.msra.gmra.mxu0 %v2509_v33 }
 0x19c   : > { %v2337_v34 = vpop.f32.mrf.mxu0 }
 0x19d   : > { %v2296_v36 = vpop.f32.mrf.mxu1 }
 0x19e   : > { %v6572_v37 = vadd.f32 %v2337_v34, %v2296_v36  ;;  %v2339_v38 = vpop.f32.mrf.mxu0 }
 0x19f   : > { %v2298_v39 = vpop.f32.mrf.mxu1 }
 0x1a0   : > { %v6574_v40 = vadd.f32 %v2339_v38, %v2298_v39  ;;  %v2341_v42 = vpop.f32.mrf.mxu0 }
 0x1a1   : > { %v2300_v28 = vpop.f32.mrf.mxu1  ;;  %v5254_v42 = vld [vmem:[%s7122_s2 + $0x1e0] ss:$16 sps:$4 sm:$0xff]  }
 0x1a2   : > { %v2342_v43 = vpop.f32.mrf.mxu0  ;;  %v5256_v28 = vld [vmem:[%s7122_s2 + $0x1e4] ss:$16 sps:$4 sm:$0xff]  }
 0x1a3   : > { %v2301_v44 = vpop.f32.mrf.mxu1  ;;  %v5262_v43 = vld [vmem:[%s7122_s2 + $0x1c4] ss:$16 sps:$4 sm:$0xff]   ;;  %2954 = vmatprep.subr.bf16.mxu0 %v5256_v28  ;;  %v5311_v28 = vld [vmem:[%s7122_s2 + $0xc8] ss:$16 sps:$4 sm:$0xff]  }
 0x1a4   : > { %2955 = vmatpush1.bf16.msra.mxu0 %v5254_v42  ;;  %v5260_v44 = vld [vmem:[%s7122_s2 + $0x1c0] ss:$16 sps:$4 sm:$0xff]  }
 0x1a5   : > { %2956 = vmatprep.subr.bf16.mxu0 %v5262_v43  ;;  %v5308_v42 = vld [vmem:[%s7122_s2 + $0xc0] ss:$16 sps:$4 sm:$0xff]   ;;  %v5316_v43 = vld [vmem:[%s7122_s2 + $0xa4] ss:$16 sps:$4 sm:$0xff]  }
 0x1a8   : > { %2957 = vmatpush1.bf16.msra.mxu0 %v5260_v44  ;;  %v5319_v44 = vld [vmem:[%s7122_s2 + $0xac] ss:$16 sps:$4 sm:$0xff]  }
 0x1c1   : > { %v2419_v45 = vpop.f32.mrf.mxu1 }
 0x1c3   : > { %v2421_v46 = vpop.f32.mrf.mxu1 }
 0x1c5   : > { %v2423_v47 = vpop.f32.mrf.mxu1 }
 0x1c6   : > { %v5274_v47 = vld [vmem:[%s7122_s2 + $0x184] ss:$16 sps:$4 sm:$0xff]  }
 0x1c7   : > { %v2424_v48 = vpop.f32.mrf.mxu1 }
 0x1c8   : > { %v5272_v48 = vld [vmem:[%s7122_s2 + $0x180] ss:$16 sps:$4 sm:$0xff]  }
 0x1dc   : > { %v2378_v49 = vpop.f32.mrf.mxu0 }
 0x1dd   : > { %v2420_v31 = vadd.f32 %v2419_v45, %v2378_v49  ;;  %v5268_v45 = vld [vmem:[%s7122_s2 + $0x1a4] ss:$16 sps:$4 sm:$0xff]  }
 0x1de   : > { %v2380_v35 = vpop.f32.mrf.mxu0  ;;  %2958 = vmatprep.subr.bf16.mxu0 %v5268_v45  ;;  %v5280_v49 = vld [vmem:[%s7122_s2 + $0x164] ss:$16 sps:$4 sm:$0xff]  }
 0x1df   : > { %v2516_v50 = vpack.c.bf16 %v2420_v31, %v2420_v31  ;;  %v2422_v51 = vadd.f32 %v2421_v46, %v2380_v35  ;;  %v5266_v46 = vld [vmem:[%s7122_s2 + $0x1a0] ss:$16 sps:$4 sm:$0xff]   ;;  %v5286_v35 = vld [vmem:[%s7122_s2 + $0x144] ss:$16 sps:$4 sm:$0xff]  }
 0x1e0   : > { %v2382_v53 = vpop.f32.mrf.mxu0  ;;  %2959 = vmatpush1.bf16.msra.mxu0 %v5266_v46  ;;  %v5278_v31 = vld [vmem:[%s7122_s2 + $0x160] ss:$16 sps:$4 sm:$0xff]  }
 0x1e1   : > { %v2585_v54 = vsel %vm2583_vm2, %v2516_v50, 0  ;;  %v2517_v55 = vpack.c.bf16 %v2422_v51, %v2422_v51  ;;  %2960 = vmatprep.subr.bf16.mxu0 %v5274_v47  ;;  %v5284_v50 = vld [vmem:[%s7122_s2 + $0x140] ss:$16 sps:$4 sm:$0xff]   ;;  %v5317_v47 = vld [vmem:[%s7122_s2 + $0xa8] ss:$16 sps:$4 sm:$0xff]  }
 0x1e2   : > { %v2383_v56 = vpop.f32.mrf.mxu0  ;;  %4717 = vmatpush3.bf16.msra.mxu1 %v2585_v54  ;;  %v5314_v46 = vld [vmem:[%s7122_s2 + $0xa0] ss:$16 sps:$4 sm:$0xff]  }
 0x1e3   : > { %v6578_v57 = vsel %vm2583_vm2, %v2517_v55, 0  ;;  %4728 = vmatprep.subr.bf16.mxu1 %v5524_v19 }
 0x1e4   : > { %2961 = vmatpush1.bf16.msra.mxu0 %v5272_v48  ;;  %v5322_v48 = vld [vmem:[%s7122_s2 + $0x84] ss:$16 sps:$4 sm:$0xff]  }
 0x1e5   : > { %2962 = vmatprep.subr.bf16.mxu0 %v5280_v49  ;;  %v5325_v49 = vld [vmem:[%s7122_s2 + $0x8c] ss:$16 sps:$4 sm:$0xff]  }
 0x1e8   : > { %2963 = vmatpush1.bf16.msra.mxu0 %v5278_v31  ;;  %v5320_v31 = vld [vmem:[%s7122_s2 + $0x80] ss:$16 sps:$4 sm:$0xff]  }
 0x1e9   : > { %2964 = vmatprep.subr.bf16.mxu0 %v5286_v35  ;;  %v5323_v35 = vld [vmem:[%s7122_s2 + $0x88] ss:$16 sps:$4 sm:$0xff]  }
 0x1ec   : > { %2965 = vmatpush1.bf16.msra.mxu0 %v5284_v50  ;;  %v5328_v50 = vld [vmem:[%s7122_s2 + $0x64] ss:$16 sps:$4 sm:$0xff]  }
 0x200   : > { %v2501_v58 = vpop.f32.mrf.mxu0 }
 0x201   : > { %v2460_v59 = vpop.f32.mrf.mxu1 }
 0x202   : > { %v2502_v60 = vadd.f32 %v2501_v58, %v2460_v59  ;;  %v2503_v61 = vpop.f32.mrf.mxu0  ;;  %v5259_v58 = vld [vmem:[%s7122_s2 + $0x1ec] ss:$16 sps:$4 sm:$0xff]  }
 0x203   : > { %v2462_v62 = vpop.f32.mrf.mxu1 }
 0x204   : > { %v2518_v63 = vpack.c.bf16 %v2502_v60, %v2502_v60  ;;  %v2504_v0 = vadd.f32 %v2503_v61, %v2462_v62  ;;  %v2505_v1 = vpop.f32.mrf.mxu0  ;;  %v5257_v61 = vld [vmem:[%s7122_s2 + $0x1e8] ss:$16 sps:$4 sm:$0xff]  }
 0x205   : > { %v2464_v2 = vpop.f32.mrf.mxu1  ;;  %v5269_v1 = vld [vmem:[%s7122_s2 + $0x1a8] ss:$16 sps:$4 sm:$0xff]  }
 0x206   : > { %v6582_v3 = vsel %vm2583_vm2, %v2518_v63, 0  ;;  %v2519_v4 = vpack.c.bf16 %v2504_v0, %v2504_v0  ;;  %v2506_v5 = vpop.f32.mrf.mxu0  ;;  %v5265_v63 = vld [vmem:[%s7122_s2 + $0x1cc] ss:$16 sps:$4 sm:$0xff]  }
 0x207   : > { %v2465_v6 = vpop.f32.mrf.mxu1  ;;  %v5271_v0 = vld [vmem:[%s7122_s2 + $0x1ac] ss:$16 sps:$4 sm:$0xff]  }
 0x208   : > { %v6585_v8 = vsel %vm2583_vm2, %v2519_v4, 0  ;;  %v5277_v2 = vld [vmem:[%s7122_s2 + $0x18c] ss:$16 sps:$4 sm:$0xff]   ;;  %v5275_v4 = vld [vmem:[%s7122_s2 + $0x188] ss:$16 sps:$4 sm:$0xff]  }
 0x209   : > { %v5283_v5 = vld [vmem:[%s7122_s2 + $0x16c] ss:$16 sps:$4 sm:$0xff]   ;;  %v5281_v6 = vld [vmem:[%s7122_s2 + $0x168] ss:$16 sps:$4 sm:$0xff]  }
 0x244   : > { %v2559_v13 = vpop.f32.mrf.mxu0 }
 0x245   : > { %v2565_v14 = vmul.f32 0.1, %v2559_v13  ;;  %v5287_v13 = vld [vmem:[%s7122_s2 + $0x148] ss:$16 sps:$4 sm:$0xff]  }
 0x246   : > { %v4714_v15 = vpop.f32.mrf.mxu0 }
 0x247   : > { %v2566_v16 = vsel %vm2524_vm3, %v2565_v14, -1e+30  ;;  %v5292_v14 = vld [vmem:[%s7122_s2 + $0x124] ss:$16 sps:$4 sm:$0xff]   ;;  %v5295_v15 = vld [vmem:[%s7122_s2 + $0x12c] ss:$16 sps:$4 sm:$0xff]  }
 0x248   : > { %v2562_v17 = vpop.f32.mrf.mxu0  ;;  %v2568_v18 = vsel %vm2567_vm4, %v2566_v16, -inf  ;;  %2966 = vmatprep.subr.bf16.mxu0 %v5292_v14 }
 0x249   : > { %2569 = vmax.xlane.f32.xlu0 %v2568_v18  ;;  %v5293_v17 = vld [vmem:[%s7122_s2 + $0x128] ss:$16 sps:$4 sm:$0xff]   ;;  %v5298_v18 = vld [vmem:[%s7122_s2 + $0x104] ss:$16 sps:$4 sm:$0xff]  }
 0x24a   : > { %v4715_v20 = vpop.f32.mrf.mxu0 }
 0x24b   : > { %v5301_v20 = vld [vmem:[%s7122_s2 + $0x10c] ss:$16 sps:$4 sm:$0xff]  }
 0x24c   : > { %v2694_v21 = vpop.f32.mrf.mxu0 }
 0x24d   : > { %v2700_v22 = vmul.f32 0.1, %v2694_v21  ;;  %v5296_v21 = vld [vmem:[%s7122_s2 + $0x100] ss:$16 sps:$4 sm:$0xff]  }
 0x24e   : > { %v4726_v23 = vpop.f32.mrf.mxu0 }
 0x24f   : > { %v2701_v24 = vsel %vm2524_vm3, %v2700_v22, -1e+30  ;;  %v5299_v22 = vld [vmem:[%s7122_s2 + $0x108] ss:$16 sps:$4 sm:$0xff]   ;;  %v5304_v23 = vld [vmem:[%s7122_s2 + $0xe4] ss:$16 sps:$4 sm:$0xff]  }
 0x250   : > { %v2697_v25 = vpop.f32.mrf.mxu0  ;;  %v2702_v26 = vsel %vm2567_vm4, %v2701_v24, -inf }
 0x251   : > { %2703 = vmax.xlane.f32.xlu0 %v2702_v26  ;;  %v5526_v25 = vmov 0  }
 0x252   : > { %v4727_v27 = vpop.f32.mrf.mxu0  ;;  %2986 = vmatprep.mubr.bf16.mxu0 %v5526_v25 }
 0x2d2   : > { %v2570_v29 = vpop.xlane.xlu0 %2569 }
 0x2d3   : > { %v2571_v41 = vsub.f32 %v2566_v16, %v2570_v29  ;;  %v5290_v16 = vld [vmem:[%s7122_s2 + $0x120] ss:$16 sps:$4 sm:$0xff]  }
 0x2d4   : > { %2967 = vmatpush1.bf16.msra.mxu0 %v5290_v16 }
 0x2d5   : > { %v2572_v7 = vmul.f32 1.442695, %v2571_v41  ;;  %2968 = vmatprep.subr.bf16.mxu0 %v5298_v18 }
 0x2d7   : > { %5446 = vpow2.f32 %v2572_v7 }
 0x2d8   : > { %2969 = vmatpush1.bf16.msra.mxu0 %v5296_v21 }
 0x2d9   : > { %3196 = vmatprep.subr.bf16.mxu0 %v5304_v23 }
 0x2da   : > { %v2704_v30 = vpop.xlane.xlu0 %2703 }
 0x2db   : > { %v2705_v32 = vsub.f32 %v2701_v24, %v2704_v30  ;;  %v5307_v24 = vld [vmem:[%s7122_s2 + $0xec] ss:$16 sps:$4 sm:$0xff]   ;;  %v5302_v30 = vld [vmem:[%s7122_s2 + $0xe0] ss:$16 sps:$4 sm:$0xff]  }
 0x2dd   : > { %v2706_v33 = vmul.f32 1.442695, %v2705_v32  ;;  %v5305_v32 = vld [vmem:[%s7122_s2 + $0xe8] ss:$16 sps:$4 sm:$0xff]  }
 0x2df   : > { %5448 = vpow2.f32 %v2706_v33 }
 0x2e4   : > { %v5447_v34 = vpop.eup %5446 }
 0x2e5   : > { %v2574_v36 = vsel %vm2567_vm4, %v5447_v34, 0.0 }
 0x2e6   : > { %2575 = vadd.xlane.f32.xlu1 %v2574_v36  ;;  %v5313_v36 = vld [vmem:[%s7122_s2 + $0xcc] ss:$16 sps:$4 sm:$0xff]  }
 0x2ec   : > { %v5449_v38 = vpop.eup %5448 }
 0x2ed   : > { %v2708_v39 = vsel %vm2567_vm4, %v5449_v38, 0.0 }
 0x2ee   : > { %2709 = vadd.xlane.f32.xlu1 %v2708_v39 }
 0x36f   : > { %v2576_v51 = vpop.xlane.xlu1 %2575 }
 0x370   : > { %5450 = vrcp.f32 %v2576_v51  ;;  %v5331_v51 = vld [vmem:[%s7122_s2 + $0x6c] ss:$16 sps:$4 sm:$0xff]  }
 0x377   : > { %v2710_v53 = vpop.xlane.xlu1 %2709 }
 0x378   : > { %5452 = vrcp.f32 %v2710_v53  ;;  %v5326_v53 = vld [vmem:[%s7122_s2 + $0x60] ss:$16 sps:$4 sm:$0xff]  }
 0x37d   : > { %v5451_v54 = vpop.eup %5450 }
 0x37e   : > { %v2578_v55 = vmul.f32 %v5451_v54, %v5447_v34  ;;  %v5310_v34 = vld [vmem:[%s7122_s2 + $0xc4] ss:$16 sps:$4 sm:$0xff]   ;;  %v5329_v54 = vld [vmem:[%s7122_s2 + $0x68] ss:$16 sps:$4 sm:$0xff]  }
 0x380   : > { %v2579_v56 = vpack.c.bf16 %v2578_v55, %v2578_v55  ;;  %v5334_v55 = vld [vmem:[%s7122_s2 + $0x44] ss:$16 sps:$4 sm:$0xff]  }
 0x382   : > { %4719 = vmatmul.mubr.msk.bf16.vlgmr.msra.gmra.mxu1 %vm2567_vm4, %v2579_v56  ;;  %v5337_v56 = vld [vmem:[%s7122_s2 + $0x4c] ss:$16 sps:$4 sm:$0xff]  }
 0x383   : > { %4729 = vmatpush3.bf16.msra.mxu1 %v6578_v57  ;;  %4730 = vmatprep.mubr.msk.bf16.mxu1 %vm5525_vm1, %v5524_v19  ;;  %v5263_v57 = vld [vmem:[%s7122_s2 + $0x1c8] ss:$16 sps:$4 sm:$0xff]  }
 0x384   : > { %2995 = vmatprep.subr.bf16.mxu1 %v5259_v58  ;;  %v5332_v58 = vld [vmem:[%s7122_s2 + $0x40] ss:$16 sps:$4 sm:$0xff]  }
 0x385   : > { %v5453_v59 = vpop.eup %5452 }
 0x386   : > { %v2712_v60 = vmul.f32 %v5453_v59, %v5449_v38  ;;  %v5335_v59 = vld [vmem:[%s7122_s2 + $0x48] ss:$16 sps:$4 sm:$0xff]  }
 0x388   : > { %v2713_v62 = vpack.c.bf16 %v2712_v60, %v2712_v60  ;;  %v5340_v60 = vld [vmem:[%s7122_s2 + $0x24] ss:$16 sps:$4 sm:$0xff]  }
 0x38a   : > { %4731 = vmatmul.mubr.msk.bf16.vlgmr.msra.gmra.mxu1 %vm2567_vm4, %v2713_v62  ;;  %v5338_v62 = vld [vmem:[%s7122_s2 + $0x20] ss:$16 sps:$4 sm:$0xff]  }
 0x38b   : > { %2996 = vmatpush1.bf16.msra.mxu1 %v5257_v61  ;;  %3027 = vmatprep.mubr.bf16.mxu1 %v5526_v25  ;;  %v5343_v61 = vld [vmem:[%s7122_s2 + $0x2c] ss:$16 sps:$4 sm:$0xff]  }
 0x38c   : > { %2997 = vmatprep.subr.bf16.mxu1 %v5265_v63  ;;  %v5341_v63 = vld [vmem:[%s7122_s2 + $0x28] ss:$16 sps:$4 sm:$0xff]  }
 0x38f   : > { %2998 = vmatpush1.bf16.msra.mxu1 %v5263_v57  ;;  %v5346_v57 = vld [vmem:[%s7122_s2 + $0x4] ss:$16 sps:$4 sm:$0xff]  }
 0x390   : > { %2999 = vmatprep.subr.bf16.mxu1 %v5271_v0  ;;  %v5349_v0 = vld [vmem:[%s7122_s2 + $0xc] ss:$16 sps:$4 sm:$0xff]  }
 0x393   : > { %3000 = vmatpush1.bf16.msra.mxu1 %v5269_v1  ;;  %v5344_v1 = vld [vmem:[%s7122_s2] ss:$16 sps:$4 sm:$0xff]  }
 0x394   : > { %3001 = vmatprep.subr.bf16.mxu1 %v5277_v2  ;;  %v5347_v2 = vld [vmem:[%s7122_s2 + $0x8] ss:$16 sps:$4 sm:$0xff]  }
 0x397   : > { %3002 = vmatpush1.bf16.msra.mxu1 %v5275_v4 }
 0x398   : > { %3003 = vmatprep.subr.bf16.mxu1 %v5283_v5  ;;  %v2514_v5 = vpack.c.bf16 %v6572_v37, %v6572_v37 }
 0x39b   : > { %3004 = vmatpush1.bf16.msra.mxu1 %v5281_v6  ;;  %v2510_v6 = vpack.c.bf16 %v6547_v10, %v6547_v10 }
 0x39c   : > { %3005 = vmatprep.subr.bf16.mxu1 %v5289_v9 }
 0x39f   : > { %3006 = vmatpush1.bf16.msra.mxu1 %v5287_v13 }
 0x3a0   : > { %3007 = vmatprep.subr.bf16.mxu1 %v5295_v15 }
 0x3a3   : > { %3008 = vmatpush1.bf16.msra.mxu1 %v5293_v17 }
 0x3a4   : > { %3009 = vmatprep.subr.bf16.mxu1 %v5301_v20 }
 0x3a7   : > { %3010 = vmatpush1.bf16.msra.mxu1 %v5299_v22 }
 0x3a8   : > { %3237 = vmatprep.subr.bf16.mxu1 %v5307_v24 }
 0x442   : > { %v6712_v26 = vpop.f32.mrf.mxu1 }
 0x443   : > { %v2627_v4 = vpack.c.bf16 %v6712_v26, %v6712_v26 }
 0x444   : > { %v4720_v27 = vpop.f32.mrf.mxu1 }
 0x446   : > { %v2624_v29 = vpop.f32.mrf.mxu1 }
 0x448   : > { %v4721_v41 = vpop.f32.mrf.mxu1 }
 0x44a   : > { %v2754_v7 = vpop.f32.mrf.mxu1 }
 0x44b   : > { %v2760_v33 = vpack.c.bf16 %v2754_v7, %v2754_v7 }
 0x44c   : > { %v4732_v38 = vpop.f32.mrf.mxu1 }
 0x44d   : > { %2987 = vmatmul.mubr.bf16.vlgmr.msra.gmra.mxu0 %v2760_v33  ;;  %3028 = vmatmul.mubr.bf16.vlgmr.msra.gmra.mxu1 %v2760_v33 }
 0x44e   : > { %3197 = vmatpush1.bf16.msra.mxu0 %v5302_v30  ;;  %3238 = vmatpush1.bf16.msra.mxu1 %v5305_v32  ;;  %v2757_v39 = vpop.f32.mrf.mxu1 }
 0x44f   : > { %3198 = vmatprep.subr.bf16.mxu0 %v5310_v34  ;;  %3239 = vmatprep.subr.bf16.mxu1 %v5313_v36 }
 0x450   : > { %v4733_v45 = vpop.f32.mrf.mxu1  ;;  %3228 = vmatprep.mubr.bf16.mxu0 %v5526_v25  ;;  %3269 = vmatprep.mubr.bf16.mxu1 %v5526_v25 }
 0x452   : > { %3199 = vmatpush1.bf16.msra.mxu0 %v5308_v42  ;;  %3240 = vmatpush1.bf16.msra.mxu1 %v5311_v28 }
 0x453   : > { %3200 = vmatprep.subr.bf16.mxu0 %v5316_v43  ;;  %3241 = vmatprep.subr.bf16.mxu1 %v5319_v44 }
 0x456   : > { %3201 = vmatpush1.bf16.msra.mxu0 %v5314_v46  ;;  %3242 = vmatpush1.bf16.msra.mxu1 %v5317_v47  ;;  %v5350_v46 = vld [vmem:[%s7122_s2 + $0x2e0] ss:$16 sps:$4 sm:$0xff]   ;;  %v5352_v47 = vld [vmem:[%s7122_s2 + $0x2e4] ss:$16 sps:$4 sm:$0xff]  }
 0x457   : > { %3202 = vmatprep.subr.bf16.mxu0 %v5322_v48  ;;  %3243 = vmatprep.subr.bf16.mxu1 %v5325_v49  ;;  %v5355_v48 = vld [vmem:[%s7122_s2 + $0x2ec] ss:$16 sps:$4 sm:$0xff]   ;;  %v5358_v49 = vld [vmem:[%s7122_s2 + $0x2c4] ss:$16 sps:$4 sm:$0xff]  }
 0x45a   : > { %3203 = vmatpush1.bf16.msra.mxu0 %v5320_v31  ;;  %3244 = vmatpush1.bf16.msra.mxu1 %v5323_v35  ;;  %v5356_v31 = vld [vmem:[%s7122_s2 + $0x2c0] ss:$16 sps:$4 sm:$0xff]   ;;  %v5364_v35 = vld [vmem:[%s7122_s2 + $0x2a4] ss:$16 sps:$4 sm:$0xff]  }
 0x45b   : > { %3204 = vmatprep.subr.bf16.mxu0 %v5328_v50  ;;  %3245 = vmatprep.subr.bf16.mxu1 %v5331_v51  ;;  %v5362_v50 = vld [vmem:[%s7122_s2 + $0x2a0] ss:$16 sps:$4 sm:$0xff]   ;;  %v5370_v51 = vld [vmem:[%s7122_s2 + $0x284] ss:$16 sps:$4 sm:$0xff]  }
 0x45e   : > { %3205 = vmatpush1.bf16.msra.mxu0 %v5326_v53  ;;  %3246 = vmatpush1.bf16.msra.mxu1 %v5329_v54  ;;  %v5368_v53 = vld [vmem:[%s7122_s2 + $0x280] ss:$16 sps:$4 sm:$0xff]   ;;  %v5376_v54 = vld [vmem:[%s7122_s2 + $0x264] ss:$16 sps:$4 sm:$0xff]  }
 0x45f   : > { %3206 = vmatprep.subr.bf16.mxu0 %v5334_v55  ;;  %3247 = vmatprep.subr.bf16.mxu1 %v5337_v56  ;;  %v5374_v55 = vld [vmem:[%s7122_s2 + $0x260] ss:$16 sps:$4 sm:$0xff]   ;;  %v5382_v56 = vld [vmem:[%s7122_s2 + $0x244] ss:$16 sps:$4 sm:$0xff]  }
 0x462   : > { %3207 = vmatpush1.bf16.msra.mxu0 %v5332_v58  ;;  %3248 = vmatpush1.bf16.msra.mxu1 %v5335_v59  ;;  %v5380_v58 = vld [vmem:[%s7122_s2 + $0x240] ss:$16 sps:$4 sm:$0xff]   ;;  %v5388_v59 = vld [vmem:[%s7122_s2 + $0x224] ss:$16 sps:$4 sm:$0xff]  }
 0x463   : > { %3208 = vmatprep.subr.bf16.mxu0 %v5340_v60  ;;  %3249 = vmatprep.subr.bf16.mxu1 %v5343_v61  ;;  %v5386_v60 = vld [vmem:[%s7122_s2 + $0x220] ss:$16 sps:$4 sm:$0xff]   ;;  %v5394_v61 = vld [vmem:[%s7122_s2 + $0x204] ss:$16 sps:$4 sm:$0xff]  }
 0x466   : > { %3209 = vmatpush1.bf16.msra.mxu0 %v5338_v62  ;;  %3250 = vmatpush1.bf16.msra.mxu1 %v5341_v63  ;;  %v5392_v62 = vld [vmem:[%s7122_s2 + $0x200] ss:$16 sps:$4 sm:$0xff]  }
 0x467   : > { %3210 = vmatprep.subr.bf16.mxu0 %v5346_v57  ;;  %3251 = vmatprep.subr.bf16.mxu1 %v5349_v0 }
 0x46a   : > { %3211 = vmatpush1.bf16.msra.mxu0 %v5344_v1  ;;  %3252 = vmatpush1.bf16.msra.mxu1 %v5347_v2  ;;  %v5353_v1 = vld [vmem:[%s7122_s2 + $0x2e8] ss:$16 sps:$4 sm:$0xff]  }
 0x46b   : > { %4734 = vmatprep.subr.bf16.mxu0 %v5524_v19  ;;  %4740 = vmatprep.subr.bf16.mxu1 %v5524_v19 }
 0x46d   : > { %3229 = vmatmul.mubr.bf16.vlgmr.msra.gmra.mxu0 %v2627_v4  ;;  %3270 = vmatmul.mubr.bf16.vlgmr.msra.gmra.mxu1 %v2627_v4  ;;  %v5361_v4 = vld [vmem:[%s7122_s2 + $0x2cc] ss:$16 sps:$4 sm:$0xff]  }
 0x46e   : > { %4735 = vmatpush3.bf16.xpose.msra.mxu0 %v2514_v5  ;;  %4741 = vmatpush3.bf16.msra.mxu1 %v6582_v3  ;;  %v5359_v5 = vld [vmem:[%s7122_s2 + $0x2c8] ss:$16 sps:$4 sm:$0xff]  }
 0x46f   : > { %4736 = vmatprep.mubr.msk.bf16.mxu0 %vm5525_vm1, %v5524_v19  ;;  %4742 = vmatprep.mubr.msk.bf16.mxu1 %vm5525_vm1, %v5524_v19 }
 0x470   : > { %3572 = vmatprep.subr.bf16.mxu0 %v5352_v47  ;;  %3613 = vmatprep.subr.bf16.mxu1 %v5355_v48 }
 0x475   : > { %4737 = vmatmul.mubr.bf16.vlgmr.msra.gmra.mxu0 %v2510_v6  ;;  %v5367_v6 = vld [vmem:[%s7122_s2 + $0x2ac] ss:$16 sps:$4 sm:$0xff]  }
 0x476   : > { %3604 = vmatprep.mubr.bf16.mxu0 %v5526_v25  ;;  %3573 = vmatpush1.bf16.msra.mxu0 %v5350_v46 }
 0x477   : > { %3574 = vmatprep.subr.bf16.mxu0 %v5358_v49 }
 0x47a   : > { %3575 = vmatpush1.bf16.msra.mxu0 %v5356_v31 }
 0x47b   : > { %3576 = vmatprep.subr.bf16.mxu0 %v5364_v35 }
 0x47e   : > { %3577 = vmatpush1.bf16.msra.mxu0 %v5362_v50  ;;  %v5398_v50 = vld [vmem:[%s7122_s2 + $0x3e0] ss:$16 sps:$4 sm:$0xff]  }
 0x47f   : > { %3578 = vmatprep.subr.bf16.mxu0 %v5370_v51  ;;  %v5403_v51 = vld [vmem:[%s7122_s2 + $0x3ec] ss:$16 sps:$4 sm:$0xff]  }
 0x482   : > { %3579 = vmatpush1.bf16.msra.mxu0 %v5368_v53  ;;  %v5406_v53 = vld [vmem:[%s7122_s2 + $0x3c4] ss:$16 sps:$4 sm:$0xff]  }
 0x483   : > { %3580 = vmatprep.subr.bf16.mxu0 %v5376_v54  ;;  %v5404_v54 = vld [vmem:[%s7122_s2 + $0x3c0] ss:$16 sps:$4 sm:$0xff]  }
 0x486   : > { %3581 = vmatpush1.bf16.msra.mxu0 %v5374_v55  ;;  %v5412_v55 = vld [vmem:[%s7122_s2 + $0x3a4] ss:$16 sps:$4 sm:$0xff]  }
 0x487   : > { %3582 = vmatprep.subr.bf16.mxu0 %v5382_v56  ;;  %v5410_v56 = vld [vmem:[%s7122_s2 + $0x3a0] ss:$16 sps:$4 sm:$0xff]  }
 0x48a   : > { %3583 = vmatpush1.bf16.msra.mxu0 %v5380_v58  ;;  %v5418_v58 = vld [vmem:[%s7122_s2 + $0x384] ss:$16 sps:$4 sm:$0xff]  }
 0x48b   : > { %3584 = vmatprep.subr.bf16.mxu0 %v5388_v59  ;;  %v5416_v59 = vld [vmem:[%s7122_s2 + $0x380] ss:$16 sps:$4 sm:$0xff]  }
 0x48e   : > { %3585 = vmatpush1.bf16.msra.mxu0 %v5386_v60  ;;  %v5424_v60 = vld [vmem:[%s7122_s2 + $0x364] ss:$16 sps:$4 sm:$0xff]  }
 0x48f   : > { %3586 = vmatprep.subr.bf16.mxu0 %v5394_v61  ;;  %v5422_v61 = vld [vmem:[%s7122_s2 + $0x360] ss:$16 sps:$4 sm:$0xff]  }
 0x492   : > { %3587 = vmatpush1.bf16.msra.mxu0 %v5392_v62  ;;  %v5430_v62 = vld [vmem:[%s7122_s2 + $0x344] ss:$16 sps:$4 sm:$0xff]  }
 0x493   : > { %4746 = vmatprep.subr.bf16.mxu0 %v5524_v19 }
 0x50d   : > { %v2988_v9 = vpop.f32.mrf.mxu0  ;;  %v3029_v13 = vpop.f32.mrf.mxu1 }
 0x50f   : > { %v2990_v37 = vpop.f32.mrf.mxu0  ;;  %v3031_v14 = vpop.f32.mrf.mxu1 }
 0x511   : > { %v2992_v15 = vpop.f32.mrf.mxu0  ;;  %v3033_v16 = vpop.f32.mrf.mxu1 }
 0x512   : > { %v5377_v15 = vld [vmem:[%s7122_s2 + $0x268] ss:$16 sps:$4 sm:$0xff]   ;;  %v5385_v16 = vld [vmem:[%s7122_s2 + $0x24c] ss:$16 sps:$4 sm:$0xff]  }
 0x513   : > { %v2993_v17 = vpop.f32.mrf.mxu0  ;;  %v3034_v3 = vpop.f32.mrf.mxu1 }
 0x514   : > { %v5383_v17 = vld [vmem:[%s7122_s2 + $0x248] ss:$16 sps:$4 sm:$0xff]   ;;  %v5391_v3 = vld [vmem:[%s7122_s2 + $0x22c] ss:$16 sps:$4 sm:$0xff]  }
 0x52d   : > { %v3230_v18 = vpop.f32.mrf.mxu0  ;;  %v3271_v20 = vpop.f32.mrf.mxu1 }
 0x52e   : > { %v6820_v21 = vadd.f32 %v3230_v18, %v2988_v9  ;;  %v6822_v22 = vadd.f32 %v3271_v20, %v3029_v13  ;;  %v5365_v9 = vld [vmem:[%s7122_s2 + $0x2a8] ss:$16 sps:$4 sm:$0xff]   ;;  %v5373_v13 = vld [vmem:[%s7122_s2 + $0x28c] ss:$16 sps:$4 sm:$0xff]  }
 0x52f   : > { %v3232_v23 = vpop.f32.mrf.mxu0  ;;  %v3273_v24 = vpop.f32.mrf.mxu1  ;;  %v5389_v18 = vld [vmem:[%s7122_s2 + $0x228] ss:$16 sps:$4 sm:$0xff]   ;;  %v5397_v20 = vld [vmem:[%s7122_s2 + $0x20c] ss:$16 sps:$4 sm:$0xff]  }
 0x530   : > { %v6824_v10 = vadd.f32 %v3232_v23, %v2990_v37  ;;  %v6826_v26 = vadd.f32 %v3273_v24, %v3031_v14  ;;  %v5371_v37 = vld [vmem:[%s7122_s2 + $0x288] ss:$16 sps:$4 sm:$0xff]   ;;  %v5379_v14 = vld [vmem:[%s7122_s2 + $0x26c] ss:$16 sps:$4 sm:$0xff]  }
 0x531   : > { %v3234_v27 = vpop.f32.mrf.mxu0  ;;  %v3275_v29 = vpop.f32.mrf.mxu1  ;;  %v5395_v23 = vld [vmem:[%s7122_s2 + $0x208] ss:$16 sps:$4 sm:$0xff]  }
 0x532   : > { %v2515_v29 = vpack.c.bf16 %v6574_v40, %v6574_v40 }
 0x533   : > { %v3235_v41 = vpop.f32.mrf.mxu0  ;;  %v3276_v7 = vpop.f32.mrf.mxu1 }
 0x535   : > { %v3312_v30 = vpop.f32.mrf.mxu0 }
 0x536   : > { %v3318_v32 = vmul.f32 0.1, %v3312_v30 }
 0x537   : > { %v4738_v33 = vpop.f32.mrf.mxu0 }
 0x538   : > { %v3319_v34 = vsel %vm2524_vm3, %v3318_v32, -1e+30  ;;  %v2511_v32 = vpack.c.bf16 %v6555_v52, %v6555_v52 }
 0x539   : > { %v3315_v36 = vpop.f32.mrf.mxu0  ;;  %v3320_v38 = vsel %vm2567_vm4, %v3319_v34, -inf }
 0x53a   : > { %3321 = vmax.xlane.f32.xlu0 %v3320_v38 }
 0x53b   : > { %v4739_v39 = vpop.f32.mrf.mxu0 }
 0x5c3   : > { %v3322_v42 = vpop.xlane.xlu0 %3321 }
 0x5c4   : > { %v3323_v28 = vsub.f32 %v3319_v34, %v3322_v42 }
 0x5c6   : > { %v3324_v43 = vmul.f32 1.442695, %v3323_v28 }
 0x5c8   : > { %5454 = vpow2.f32 %v3324_v43 }
 0x5d5   : > { %v5455_v44 = vpop.eup %5454 }
 0x5d6   : > { %v3326_v45 = vsel %vm2567_vm4, %v5455_v44, 0.0 }
 0x5d7   : > { %3327 = vadd.xlane.f32.xlu1 %v3326_v45 }
 0x660   : > { %v3328_v63 = vpop.xlane.xlu1 %3327 }
 0x661   : > { %5456 = vrcp.f32 %v3328_v63  ;;  %v5428_v63 = vld [vmem:[%s7122_s2 + $0x340] ss:$16 sps:$4 sm:$0xff]  }
 0x66e   : > { %v5457_v57 = vpop.eup %5456 }
 0x66f   : > { %v3330_v0 = vmul.f32 %v5457_v57, %v5455_v44  ;;  %v5436_v57 = vld [vmem:[%s7122_s2 + $0x324] ss:$16 sps:$4 sm:$0xff]  }
 0x671   : > { %v3331_v2 = vpack.c.bf16 %v3330_v0, %v3330_v0  ;;  %v5434_v0 = vld [vmem:[%s7122_s2 + $0x320] ss:$16 sps:$4 sm:$0xff]  }
 0x673   : > { %4743 = vmatmul.mubr.msk.bf16.vlgmr.msra.gmra.mxu1 %vm2567_vm4, %v3331_v2  ;;  %v5440_v2 = vld [vmem:[%s7122_s2 + $0x300] ss:$16 sps:$4 sm:$0xff]  }
 0x674   : > { %3614 = vmatpush1.bf16.msra.mxu1 %v5353_v1  ;;  %3645 = vmatprep.mubr.bf16.mxu1 %v5526_v25  ;;  %v5442_v1 = vld [vmem:[%s7122_s2 + $0x304] ss:$16 sps:$4 sm:$0xff]  }
 0x675   : > { %3615 = vmatprep.subr.bf16.mxu1 %v5361_v4 }
 0x678   : > { %3616 = vmatpush1.bf16.msra.mxu1 %v5359_v5 }
 0x679   : > { %3617 = vmatprep.subr.bf16.mxu1 %v5367_v6 }
 0x67c   : > { %3618 = vmatpush1.bf16.msra.mxu1 %v5365_v9  ;;  %v5401_v9 = vld [vmem:[%s7122_s2 + $0x3e8] ss:$16 sps:$4 sm:$0xff]  }
 0x67d   : > { %3619 = vmatprep.subr.bf16.mxu1 %v5373_v13 }
 0x680   : > { %3620 = vmatpush1.bf16.msra.mxu1 %v5371_v37  ;;  %v5409_v37 = vld [vmem:[%s7122_s2 + $0x3cc] ss:$16 sps:$4 sm:$0xff]  }
 0x681   : > { %3621 = vmatprep.subr.bf16.mxu1 %v5379_v14  ;;  %v5407_v14 = vld [vmem:[%s7122_s2 + $0x3c8] ss:$16 sps:$4 sm:$0xff]  }
 0x684   : > { %3622 = vmatpush1.bf16.msra.mxu1 %v5377_v15  ;;  %v5415_v15 = vld [vmem:[%s7122_s2 + $0x3ac] ss:$16 sps:$4 sm:$0xff]  }
 0x685   : > { %3623 = vmatprep.subr.bf16.mxu1 %v5385_v16  ;;  %v5413_v16 = vld [vmem:[%s7122_s2 + $0x3a8] ss:$16 sps:$4 sm:$0xff]  }
 0x688   : > { %3624 = vmatpush1.bf16.msra.mxu1 %v5383_v17  ;;  %v5421_v17 = vld [vmem:[%s7122_s2 + $0x38c] ss:$16 sps:$4 sm:$0xff]  }
 0x689   : > { %3625 = vmatprep.subr.bf16.mxu1 %v5391_v3  ;;  %v5427_v3 = vld [vmem:[%s7122_s2 + $0x36c] ss:$16 sps:$4 sm:$0xff]  }
 0x68c   : > { %3626 = vmatpush1.bf16.msra.mxu1 %v5389_v18  ;;  %v5425_v18 = vld [vmem:[%s7122_s2 + $0x368] ss:$16 sps:$4 sm:$0xff]  }
 0x68d   : > { %3627 = vmatprep.subr.bf16.mxu1 %v5397_v20  ;;  %v5433_v20 = vld [vmem:[%s7122_s2 + $0x34c] ss:$16 sps:$4 sm:$0xff]  }
 0x690   : > { %3628 = vmatpush1.bf16.msra.mxu1 %v5395_v23  ;;  %v5431_v23 = vld [vmem:[%s7122_s2 + $0x348] ss:$16 sps:$4 sm:$0xff]  }
 0x691   : > { %4752 = vmatprep.subr.bf16.mxu1 %v5524_v19 }
 0x733   : > { %v3372_v24 = vpop.f32.mrf.mxu1 }
 0x734   : > { %v3378_v27 = vpack.c.bf16 %v3372_v24, %v3372_v24  ;;  %v5439_v24 = vld [vmem:[%s7122_s2 + $0x32c] ss:$16 sps:$4 sm:$0xff]  }
 0x735   : > { %v4744_v41 = vpop.f32.mrf.mxu1 }
 0x736   : > { %3605 = vmatmul.mubr.bf16.vlgmr.msra.gmra.mxu0 %v3378_v27  ;;  %3646 = vmatmul.mubr.bf16.vlgmr.msra.gmra.mxu1 %v3378_v27  ;;  %v5437_v27 = vld [vmem:[%s7122_s2 + $0x328] ss:$16 sps:$4 sm:$0xff]  }
 0x737   : > { %4747 = vmatpush3.bf16.xpose.msra.mxu0 %v2515_v29  ;;  %4753 = vmatpush3.bf16.msra.mxu1 %v6585_v8  ;;  %v3375_v7 = vpop.f32.mrf.mxu1  ;;  %v5445_v29 = vld [vmem:[%s7122_s2 + $0x30c] ss:$16 sps:$4 sm:$0xff]   ;;  %v5443_v41 = vld [vmem:[%s7122_s2 + $0x308] ss:$16 sps:$4 sm:$0xff]  }
 0x738   : > { %4748 = vmatprep.mubr.msk.bf16.mxu0 %vm5525_vm1, %v5524_v19  ;;  %4754 = vmatprep.mubr.msk.bf16.mxu1 %vm5525_vm1, %v5524_v19 }
 0x739   : > { %v4745_v30 = vpop.f32.mrf.mxu1  ;;  %3952 = vmatprep.subr.bf16.mxu0 %v5400_v12  ;;  %3993 = vmatprep.subr.bf16.mxu1 %v5403_v51 }
 0x73e   : > { %4749 = vmatmul.mubr.bf16.vlgmr.msra.gmra.mxu0 %v2511_v32 }
 0x73f   : > { %3984 = vmatprep.mubr.bf16.mxu0 %v5526_v25  ;;  %3953 = vmatpush1.bf16.msra.mxu0 %v5398_v50 }
 0x740   : > { %3954 = vmatprep.subr.bf16.mxu0 %v5406_v53 }
 0x743   : > { %3955 = vmatpush1.bf16.msra.mxu0 %v5404_v54 }
 0x744   : > { %3956 = vmatprep.subr.bf16.mxu0 %v5412_v55 }
 0x747   : > { %3957 = vmatpush1.bf16.msra.mxu0 %v5410_v56 }
 0x748   : > { %3958 = vmatprep.subr.bf16.mxu0 %v5418_v58 }
 0x74b   : > { %3959 = vmatpush1.bf16.msra.mxu0 %v5416_v59 }
 0x74c   : > { %3960 = vmatprep.subr.bf16.mxu0 %v5424_v60 }
 0x74f   : > { %3961 = vmatpush1.bf16.msra.mxu0 %v5422_v61 }
 0x750   : > { %3962 = vmatprep.subr.bf16.mxu0 %v5430_v62 }
 0x753   : > { %3963 = vmatpush1.bf16.msra.mxu0 %v5428_v63 }
 0x754   : > { %3964 = vmatprep.subr.bf16.mxu0 %v5436_v57 }
 0x757   : > { %3965 = vmatpush1.bf16.msra.mxu0 %v5434_v0 }
 0x758   : > { %3966 = vmatprep.subr.bf16.mxu0 %v5442_v1 }
 0x75b   : > { %3967 = vmatpush1.bf16.msra.mxu0 %v5440_v2 }
 0x7f6   : > { %v3606_v40 = vpop.f32.mrf.mxu0  ;;  %v3647_v33 = vpop.f32.mrf.mxu1 }
 0x7f7   : > { %v6944_v34 = vadd.f32 %v3606_v40, %v6820_v21  ;;  %v6947_v8 = vadd.f32 %v3647_v33, %v6822_v22 }
 0x7f8   : > { %v3608_v36 = vpop.f32.mrf.mxu0  ;;  %v3649_v38 = vpop.f32.mrf.mxu1 }
 0x7f9   : > { %v6950_v39 = vadd.f32 %v3608_v36, %v6824_v10  ;;  %v6953_v19 = vadd.f32 %v3649_v38, %v6826_v26  ;;  %v4042_v36 = vsub.s32 0, %v6587_v11  ;;  %v4050_v38 = vsub.s32 2, %v6587_v11 }
 0x7fa   : > { %v3610_v52 = vpop.f32.mrf.mxu0  ;;  %v3651_v42 = vpop.f32.mrf.mxu1 }
 0x7fb   : > { %v4038_v52 = vld [vmem:[%s7123_s3] sm:$0xf]  ;;  %v4046_v42 = vsub.s32 1, %v6587_v11 }
 0x7fc   : > { %v3611_v28 = vpop.f32.mrf.mxu0  ;;  %v3652_v43 = vpop.f32.mrf.mxu1 }
 0x7fd   : > { %v4054_v28 = vsub.s32 3, %v6587_v11  ;;  %v4043_v43 = vrot.slane %v4038_v52, %v4042_v36 }
 0x7fe   : > { %v3692_v44 = vpop.f32.mrf.mxu0 }
 0x7ff   : > { %v3698_v45 = vmul.f32 0.1, %v3692_v44  ;;  %v4051_v44 = vrot.slane %v4038_v52, %v4050_v38 }
 0x800   : > { %v4750_v46 = vpop.f32.mrf.mxu0 }
 0x801   : > { %v3699_v21 = vsel %vm2524_vm3, %v3698_v45, -1e+30 }
 0x802   : > { %v3695_v22 = vpop.f32.mrf.mxu0  ;;  %v3700_v47 = vsel %vm2567_vm4, %v3699_v21, -inf }
 0x803   : > { %3701 = vmax.xlane.f32.xlu0 %v3700_v47  ;;  %v4047_v47 = vrot.slane %v4038_v52, %v4046_v42 }
 0x804   : > { %v4751_v10 = vpop.f32.mrf.mxu0 }
 0x805   : > { %v4055_v10 = vrot.slane %v4038_v52, %v4054_v28 }
 0x88c   : > { %v3702_v48 = vpop.xlane.xlu0 %3701 }
 0x88d   : > { %v3703_v49 = vsub.f32 %v3699_v21, %v3702_v48 }
 0x88f   : > { %v3704_v26 = vmul.f32 1.442695, %v3703_v49 }
 0x891   : > { %5458 = vpow2.f32 %v3704_v26 }
 0x89e   : > { %v5459_v31 = vpop.eup %5458 }
 0x89f   : > { %v3706_v35 = vsel %vm2567_vm4, %v5459_v31, 0.0 }
 0x8a0   : > { %3707 = vadd.xlane.f32.xlu1 %v3706_v35 }
 0x929   : > { %v3708_v4 = vpop.xlane.xlu1 %3707 }
 0x92a   : > { %5460 = vrcp.f32 %v3708_v4 }
 0x937   : > { %v5461_v5 = vpop.eup %5460 }
 0x938   : > { %v3710_v6 = vmul.f32 %v5461_v5, %v5459_v31 }
 0x93a   : > { %v3711_v13 = vpack.c.bf16 %v3710_v6, %v3710_v6 }
 0x93c   : > { %4755 = vmatmul.mubr.msk.bf16.vlgmr.msra.gmra.mxu1 %vm2567_vm4, %v3711_v13 }
 0x93d   : > { %3994 = vmatpush1.bf16.msra.mxu1 %v5401_v9  ;;  %4025 = vmatprep.mubr.bf16.mxu1 %v5526_v25  ;;  %v5419_v25 = vld [vmem:[%s7122_s2 + $0x388] ss:$16 sps:$4 sm:$0xff]  }
 0x93e   : > { %3995 = vmatprep.subr.bf16.mxu1 %v5409_v37 }
 0x941   : > { %3996 = vmatpush1.bf16.msra.mxu1 %v5407_v14 }
 0x942   : > { %3997 = vmatprep.subr.bf16.mxu1 %v5415_v15 }
 0x945   : > { %3998 = vmatpush1.bf16.msra.mxu1 %v5413_v16 }
 0x946   : > { %3999 = vmatprep.subr.bf16.mxu1 %v5421_v17 }
 0x949   : > { %4000 = vmatpush1.bf16.msra.mxu1 %v5419_v25 }
 0x94a   : > { %4001 = vmatprep.subr.bf16.mxu1 %v5427_v3 }
 0x94d   : > { %4002 = vmatpush1.bf16.msra.mxu1 %v5425_v18 }
 0x94e   : > { %4003 = vmatprep.subr.bf16.mxu1 %v5433_v20 }
 0x951   : > { %4004 = vmatpush1.bf16.msra.mxu1 %v5431_v23 }
 0x952   : > { %4005 = vmatprep.subr.bf16.mxu1 %v5439_v24 }
 0x955   : > { %4006 = vmatpush1.bf16.msra.mxu1 %v5437_v27 }
 0x956   : > { %4007 = vmatprep.subr.bf16.mxu1 %v5445_v29 }
 0x959   : > { %4008 = vmatpush1.bf16.msra.mxu1 %v5443_v41 }
 0x9fc   : > { %v3752_v7 = vpop.f32.mrf.mxu1 }
 0x9fd   : > { %v3758_v30 = vpack.c.bf16 %v3752_v7, %v3752_v7 }
 0x9fe   : > { %v4756_v32 = vpop.f32.mrf.mxu1 }
 0x9ff   : > { %3985 = vmatmul.mubr.bf16.vlgmr.msra.gmra.mxu0 %v3758_v30  ;;  %4026 = vmatmul.mubr.bf16.vlgmr.msra.gmra.mxu1 %v3758_v30 }
 0xa00   : > { %v3755_v40 = vpop.f32.mrf.mxu1 }
 0xa02   : > { %v4757_v33 = vpop.f32.mrf.mxu1 }
 0xabf   : > { %v3986_v45 = vpop.f32.mrf.mxu0  ;;  %v4027_v46 = vpop.f32.mrf.mxu1 }
 0xac0   : > { %v4034_v21 = vadd.f32 %v3986_v45, %v6944_v34  ;;  %v4036_v22 = vadd.f32 %v4027_v46, %v6947_v8 }
 0xac1   : > { %v3988_v48 = vpop.f32.mrf.mxu0  ;;  %v4029_v49 = vpop.f32.mrf.mxu1 }
 0xac2   : > { %v4060_v26 = vadd.f32 %v4043_v43, %v4034_v21  ;;  %v4062_v31 = vadd.f32 %v4051_v44, %v4036_v22  ;;  %v4035_v11 = vadd.f32 %v3988_v48, %v6950_v39  ;;  %v4037_v35 = vadd.f32 %v4029_v49, %v6953_v19 }
 0xac3   : > { %v3990_v50 = vpop.f32.mrf.mxu0  ;;  %v4031_v12 = vpop.f32.mrf.mxu1 }
 0xac4   : > { %4064 = vst [vmem:[%s190_s28] sm:$0xff] %v4060_v26  ;;  %4066 = vst [vmem:[%s190_s28 + $0x10] sm:$0xff] %v4062_v31  ;;  %v4061_v34 = vadd.f32 %v4047_v47, %v4035_v11  ;;  %v4063_v8 = vadd.f32 %v4055_v10, %v4037_v35 }
 0xac5   : > { %v3991_v39 = vpop.f32.mrf.mxu0  ;;  %v4032_v51 = vpop.f32.mrf.mxu1 }
 0xac6   : > { %4065 = vst [vmem:[%s190_s28 + $0x8] sm:$0xff] %v4061_v34  ;;  %4067 = vst.msk [vmem:[%s190_s28 + $0x18] sm:$0xff] %vm2012_vm0, %v4063_v8 }
 0xac7   : > { %5475 = shalt.err (!%p5472_p3)
}
 0xac8   : > { %s5476_s11 = scalar_lea.hbm %s7076_s19, 512  ;;  %s5480_s20 = scalar_lea.hbm %s7124_s4, 1024 }
 0xac9   : > { %p5477_p4 = scmp.ne.s32.totalorder %s7076_s19, %s5476_s11  ;;  %p5481_p9 = scmp.lt.s32.totalorder %s7076_s19, %s7124_s4 }
 0xaca   : > { %p5482_p10 = scmp.lt.s32.totalorder %s5480_s20, %s5476_s11 }
 0xacb   : > { %p5478_p7 = pnand %p5477_p4, %p5591_p5 }
 0xacc   : > { %p5483_p11 = por %p5482_p10, %p5481_p9 }
 0xacd   : > { %p5479_p8 = pneg %p5478_p7 }
 0xacf   : > { %p5484_p12 = pnand %p5483_p11, %p5479_p8 }
 0xad1   : > { %5487 = shalt.err (!%p5484_p12)
}
 0xad2   : > { %4758 = dma.vmem_to_hbm [thread:$0]  (%p5591_p5), %s7078_s29, 512, %s7076_s19, %s4069_s5  }
 0xad3 PF: > { %p4764_p13 = scmp.ge.s32.totalorder %s5522_s18, 2  ;;  %s4095_s23 = sand.u32 1, %s5510_s15  }
 0xad4   : > { %s4096_s27 = scalar_lea.sflag [#allocation3], %s4095_s23 }
 0xad5   : > { %p4761_p0 = pnand %p4764_p13, %p5595_p6 }
 0xad7   : > { %p4762_p1 = pneg %p4761_p0 }
 0xad9   : > { %5505 = dma.done.wait (%p4762_p1), %s4096_s27, 512  }
 0xada   : > { %5507 = vsyncadd (%p4762_p1), %s4096_s27, 4294966784  ;;  %p14_p2 = scmp.ge.s32.totalorder %s5578_s21, 4   ;;  %s7127_s15 = smov %s5514_s16 }
 0xadb   : > { %s7128_s16 = smov %s5518_s17  ;;  %s7129_s17 = smov %s5589_s24 }
 0xadc   : > { %s7130_s18 = smov %s5578_s21  ;;  %16 = sbr.rel (!%p14_p2) target bundleno = 3 (0x3), region = 74 }
 0xae1   :  { %4101 = vsyncpa [#allocation3], 1 }
 0xae2   :  { %4103 = vsyncpa [#allocation3 + $0x1], 1 }

</bundles_post_ra>
